<compile_context>
chip_gen: v7x
topology: tpu7x:2x2x1
jax: 0.10.0
libtpu: 0.0.40
codegen_flags: <defaults>
</compile_context>

<pallas_src>
import functools
import math

import jax
import jax.numpy as jnp
from jax import lax
from jax.experimental import pallas as pl
from jax.experimental.pallas import tpu as pltpu


def _decoder_cell_kernel(x_ref, watt_ref, wff1_ref, bff1_ref, wff2_ref, bff2_ref,
                         ln_ref, o_ref, *, Bt, S, D, H, ATT, eps):
    M = Bt * S
    cdt = watt_ref.dtype                  # matmul operand dtype (bf16 or f32)
    x = x_ref[...].astype(jnp.float32)    # (M, D); residual path stays f32
    watt = watt_ref[...]                  # (D, 8D) packed [Wq1 Wk1 Wv1 Wfc1 Wq2 Wk2 Wv2 Wfc2]ᵀ
    ln = ln_ref[...]                      # (6, D)  rows: g1 b1 g2 b2 g3 b3

    def layer_norm(z, row):
        g = ln[row:row + 1, :]
        b = ln[row + 1:row + 2, :]
        mu = jnp.mean(z, axis=-1, keepdims=True)
        zc = z - mu
        var = jnp.mean(zc * zc, axis=-1, keepdims=True)
        return zc * lax.rsqrt(var + eps) * g + b          # rsqrt -> EUP slot

    def mha(xin, base):
        # Fused QKV projection: one (M, 3D) MXU launch (1/sqrt(h) folded into Wq).
        qkv = jnp.dot(xin.astype(cdt), watt[:, base * D:(base + 3) * D],
                      preferred_element_type=jnp.float32).astype(cdt)
        q = qkv[:, 0 * D:1 * D].reshape(Bt, S, D)          # leading-dim reshape: free
        k = qkv[:, 1 * D:2 * D].reshape(Bt, S, D)
        v = qkv[:, 2 * D:3 * D].reshape(Bt, S, D)
        wfc = watt[:, (base + 3) * D:(base + 4) * D]

        # Batched attention: the dot_general batch dim covers the whole batch tile
        # (no Python unroll over Bt); only the small static head loop remains.
        ctx_parts = []
        for hh in range(H):
            sl = slice(hh * ATT, (hh + 1) * ATT)
            qh, kh, vh = q[:, :, sl], k[:, :, sl], v[:, :, sl]   # (Bt, S, ATT)
            s = jnp.einsum('bqa,bka->bqk', qh, kh,
                           preferred_element_type=jnp.float32)   # (Bt, S, S)
            m = jnp.max(s, axis=-1, keepdims=True)
            e = jnp.exp(s - m)
            den = jnp.sum(e, axis=-1, keepdims=True)
            ctx = jnp.einsum('bqk,bka->bqa', e.astype(cdt), vh,
                             preferred_element_type=jnp.float32)  # (Bt, S, ATT)
            # softmax normalization fused after the context matmul (EUP reciprocal)
            ctx_parts.append(ctx * pl.reciprocal(den))
        ctx_full = ctx_parts[0] if H == 1 else jnp.concatenate(ctx_parts, axis=-1)
        # head concat folded into a single (M, D) x (D, D) fc GEMM
        return jnp.dot(ctx_full.reshape(M, D).astype(cdt), wfc,
                       preferred_element_type=jnp.float32)

    # block 1: self-attention + residual + LayerNorm   (dropout = identity)
    att1 = mha(x, 0)
    n1 = layer_norm(att1 + x, 0)
    # block 2: enc_output is None -> attend over n1
    att2 = mha(n1, 4)
    n2 = layer_norm(att2 + n1, 2)
    # feed-forward
    h1 = jnp.maximum(
        jnp.dot(n2.astype(cdt), wff1_ref[...],
                preferred_element_type=jnp.float32) + bff1_ref[...], 0.0)
    ffo = jnp.dot(h1.astype(cdt), wff2_ref[...],
                  preferred_element_type=jnp.float32) + bff2_ref[...]
    out = layer_norm(ffo + n2, 4)
    o_ref[...] = out.astype(o_ref.dtype)


def transformer_decoder_cell_forward(x, params, *, h, batch_block=None,
                                     compute_dtype=jnp.bfloat16,
                                     vmem_limit_bytes=48 * 1024 * 1024):
    """x: (B, S, D).  params follow PyTorch layouts: attention weights (D, D),
    ff_1 weight (F, D)/bias (F,), ff_2 weight (D, F)/bias (D,), LN gamma/beta (D,).
    `compute_dtype` is the matmul operand dtype (bf16 default, f32 for parity)."""
    B, S, D = x.shape
    assert D % h == 0
    ATT = D // h
    F = params["w_ff1"].shape[0]
    inv_scale = 1.0 / math.sqrt(h)
    f32 = jnp.float32

    # Pack the 8 bias-free attention weights pre-transposed (kernel does x @ Wᵀ);
    # the 1/sqrt(h) score scale is folded into Wq so scores need no extra multiply.
    def prep(w, scale=None):
        wt = jnp.asarray(w, f32).T
        if scale is not None:
            wt = wt * scale
        return wt.astype(compute_dtype)

    watt = jnp.concatenate(
        [prep(params["wq1"], inv_scale), prep(params["wk1"]),
         prep(params["wv1"]), prep(params["wfc1"]),
         prep(params["wq2"], inv_scale), prep(params["wk2"]),
         prep(params["wv2"]), prep(params["wfc2"])], axis=1)           # (D, 8D)
    wff1 = prep(params["w_ff1"])                                        # (D, F)
    wff2 = prep(params["w_ff2"])                                        # (F, D)
    bff1 = jnp.asarray(params["b_ff1"], f32).reshape(1, F)
    bff2 = jnp.asarray(params["b_ff2"], f32).reshape(1, D)
    ln = jnp.stack([params["ln1_g"], params["ln1_b"],
                    params["ln2_g"], params["ln2_b"],
                    params["ln3_g"], params["ln3_b"]], axis=0).astype(f32)  # (6, D)

    # Batch tile: aim for >=512 MXU rows per step (multiple of 256 fills the
    # v6e/v7x 256-wide MXU; v5e's 128 divides it).  No B//2 cap: v5e/v6e are
    # single-TC so fewer, larger tiles amortize the ~0.35us/step overhead; callers
    # targeting v7x megacore can pass an explicit batch_block giving an even grid.
    if batch_block is None:
        target_rows = 512
        bt = min(B, max(1, target_rows // S))
        while bt > 1 and (B % bt != 0 or (bt < B and (bt * S) % 8 != 0)):
            bt -= 1
        if B % bt != 0 or (bt < B and (bt * S) % 8 != 0):
            bt = B                       # single block == full array: always legal
        batch_block = bt
    Bt = batch_block
    assert B % Bt == 0, "batch_block must divide the batch"
    assert Bt == B or (Bt * S) % 8 == 0, \
        "Bt*S must be a multiple of 8 when the grid has more than one step"
    M = Bt * S

    x2 = x.reshape(B * S, D)             # lane-dense 2-D slab; fills the MXU M-dim

    kernel = functools.partial(_decoder_cell_kernel, Bt=Bt, S=S, D=D, H=h,
                               ATT=ATT, eps=1e-5)

    out = pl.pallas_call(
        kernel,
        out_shape=jax.ShapeDtypeStruct((B * S, D), x.dtype),
        grid_spec=pltpu.PrefetchScalarGridSpec(
            num_scalar_prefetch=0,
            grid=(B // Bt,),
            in_specs=[
                pl.BlockSpec((M, D), lambda i: (i, 0)),        # activations (per batch tile)
                pl.BlockSpec((D, 8 * D), lambda i: (0, 0)),    # packed attention weights
                pl.BlockSpec((D, F), lambda i: (0, 0)),
                pl.BlockSpec((1, F), lambda i: (0, 0)),
                pl.BlockSpec((F, D), lambda i: (0, 0)),
                pl.BlockSpec((1, D), lambda i: (0, 0)),
                pl.BlockSpec((6, D), lambda i: (0, 0)),        # packed LayerNorm params
            ],
            out_specs=pl.BlockSpec((M, D), lambda i: (i, 0)),  # lane-dense 2-D output
        ),
        compiler_params=pltpu.CompilerParams(
            dimension_semantics=("parallel",),
            vmem_limit_bytes=vmem_limit_bytes),
    )(x2, watt, wff1, bff1, wff2, bff2, ln)
    return out.reshape(B, S, D)


# ------------------------- pure-JAX reference -------------------------

def _layer_norm_ref(z, g, b, eps=1e-5):
    mu = jnp.mean(z, axis=-1, keepdims=True)
    var = jnp.mean((z - mu) ** 2, axis=-1, keepdims=True)
    return (z - mu) / jnp.sqrt(var + eps) * g + b


def _mha_ref(xq, xkv, wq, wk, wv, wfc, h):
    B, Sq, D = xq.shape
    att = D // h
    scale = math.sqrt(h)
    q = (xq @ wq.T).reshape(B, Sq, h, att).transpose(0, 2, 1, 3)
    k = (xkv @ wk.T).reshape(B, -1, h, att).transpose(0, 2, 1, 3)
    v = (xkv @ wv.T).reshape(B, -1, h, att).transpose(0, 2, 1, 3)
    alpha = jax.nn.softmax(jnp.einsum("bhqd,bhkd->bhqk", q, k) / scale, axis=-1)
    ctx = jnp.einsum("bhqk,bhkd->bhqd", alpha, v).transpose(0, 2, 1, 3).reshape(B, Sq, D)
    return ctx @ wfc.T


def _reference(x, p, h):
    att1 = _mha_ref(x, x, p["wq1"], p["wk1"], p["wv1"], p["wfc1"], h)
    n1 = _layer_norm_ref(att1 + x, p["ln1_g"], p["ln1_b"])
    att2 = _mha_ref(n1, n1, p["wq2"], p["wk2"], p["wv2"], p["wfc2"], h)
    n2 = _layer_norm_ref(att2 + n1, p["ln2_g"], p["ln2_b"])
    mid = jnp.maximum(n2 @ p["w_ff1"].T + p["b_ff1"], 0.0)
    ffo = mid @ p["w_ff2"].T + p["b_ff2"]
    return _layer_norm_ref(ffo + n2, p["ln3_g"], p["ln3_b"])


if __name__ == "__main__":
    B, S, D, H_HEADS, F = 2, 8, 16, 4, 32   # in_size=16, h=4 (att_size=4), fc_size=32

    key = jax.random.PRNGKey(0)
    keys = jax.random.split(key, 22)

    def w(k, shape, scale=0.25):
        return scale * jax.random.normal(k, shape, dtype=jnp.float32)

    x = jax.random.normal(keys[0], (B, S, D), dtype=jnp.float32)
    params = dict(
        wq1=w(keys[1], (D, D)), wk1=w(keys[2], (D, D)),
        wv1=w(keys[3], (D, D)), wfc1=w(keys[4], (D, D)),
        wq2=w(keys[5], (D, D)), wk2=w(keys[6], (D, D)),
        wv2=w(keys[7], (D, D)), wfc2=w(keys[8], (D, D)),
        w_ff1=w(keys[9], (F, D)), b_ff1=w(keys[10], (F,), 0.1),
        w_ff2=w(keys[11], (D, F)), b_ff2=w(keys[12], (D,), 0.1),
        ln1_g=1.0 + w(keys[13], (D,), 0.05), ln1_b=w(keys[14], (D,), 0.05),
        ln2_g=1.0 + w(keys[15], (D,), 0.05), ln2_b=w(keys[16], (D,), 0.05),
        ln3_g=1.0 + w(keys[17], (D,), 0.05), ln3_b=w(keys[18], (D,), 0.05),
    )

    y_ref = _reference(x, params, H_HEADS)

    # Default path: bf16 matmul operands (MXU-rate), looser tolerance.
    y_bf16 = transformer_decoder_cell_forward(x, params, h=H_HEADS)
    jax.block_until_ready(y_bf16)
    assert y_bf16.shape == (B, S, D)
    err_bf16 = float(jnp.max(jnp.abs(y_bf16 - y_ref)))
    assert jnp.allclose(y_bf16, y_ref, atol=5e-2, rtol=5e-2), \
        f"bf16 path max abs err {err_bf16}"

    # f32 operands + multi-step grid (batch_block=1) exercises the tiled path.
    y_f32 = transformer_decoder_cell_forward(x, params, h=H_HEADS,
                                             compute_dtype=jnp.float32,
                                             batch_block=1)
    jax.block_until_ready(y_f32)
    err_f32 = float(jnp.max(jnp.abs(y_f32 - y_ref)))
    assert jnp.allclose(y_f32, y_ref, atol=5e-4, rtol=5e-4), \
        f"f32 path max abs err {err_f32}"

    print("KERNEL_OK")
</pallas_src>

<mosaic_0001>
module attributes {stable_mosaic.version = 11 : i64} {
  func.func @_decoder_cell_kernel(%arg0: i32, %arg1: memref<16x16xf32, #tpu.memory_space<vmem>>, %arg2: memref<16x128xbf16, #tpu.memory_space<vmem>>, %arg3: memref<16x32xbf16, #tpu.memory_space<vmem>>, %arg4: memref<1x32xf32, #tpu.memory_space<vmem>>, %arg5: memref<32x16xbf16, #tpu.memory_space<vmem>>, %arg6: memref<1x16xf32, #tpu.memory_space<vmem>>, %arg7: memref<6x16xf32, #tpu.memory_space<vmem>>, %arg8: memref<16x16xf32, #tpu.memory_space<vmem>>) attributes {dimension_semantics = [#tpu.dimension_semantics<parallel>], iteration_bounds = array<i64: 1>, scalar_prefetch = 0 : i64, scratch_operands = 0 : i64, tpu.core_type = #tpu.core_type<tc>, window_params = [{transform_indices = @transform_0, window_bounds = array<i64: 16, 16>}, {pipeline_mode = #tpu.pipeline_mode<synchronous>, transform_indices = @transform_1, window_bounds = array<i64: 16, 128>}, {pipeline_mode = #tpu.pipeline_mode<synchronous>, transform_indices = @transform_2, window_bounds = array<i64: 16, 32>}, {pipeline_mode = #tpu.pipeline_mode<synchronous>, transform_indices = @transform_3, window_bounds = array<i64: 1, 32>}, {pipeline_mode = #tpu.pipeline_mode<synchronous>, transform_indices = @transform_4, window_bounds = array<i64: 32, 16>}, {pipeline_mode = #tpu.pipeline_mode<synchronous>, transform_indices = @transform_5, window_bounds = array<i64: 1, 16>}, {pipeline_mode = #tpu.pipeline_mode<synchronous>, transform_indices = @transform_6, window_bounds = array<i64: 6, 16>}, {transform_indices = @transform_7, window_bounds = array<i64: 16, 16>}]} {
    %c0 = arith.constant 0 : index
    %c0_0 = arith.constant 0 : index
    %0 = vector.load %arg1[%c0, %c0_0] : memref<16x16xf32, #tpu.memory_space<vmem>>, vector<16x16xf32>
    %c0_1 = arith.constant 0 : index
    %c0_2 = arith.constant 0 : index
    %1 = vector.load %arg2[%c0_1, %c0_2] : memref<16x128xbf16, #tpu.memory_space<vmem>>, vector<16x128xbf16>
    %c0_3 = arith.constant 0 : index
    %c0_4 = arith.constant 0 : index
    %2 = vector.load %arg7[%c0_3, %c0_4] : memref<6x16xf32, #tpu.memory_space<vmem>>, vector<6x16xf32>
    %3 = arith.truncf %0 : vector<16x16xf32> to vector<16x16xbf16>
    %4 = vector.extract_strided_slice %1 {offsets = [0, 0], sizes = [16, 48], strides = [1, 1]} : vector<16x128xbf16> to vector<16x48xbf16>
    %cst = arith.constant dense<0.000000e+00> : vector<16x48xf32>
    %5 = tpu.matmul %3, %4, %cst {dimension_numbers = #tpu.dot_dimension_numbers<[1], [0], [0], [1], [0, 0, 1, 1], [], []>} : vector<16x16xbf16>, vector<16x48xbf16>, vector<16x48xf32> -> vector<16x48xf32>
    %6 = arith.truncf %5 : vector<16x48xf32> to vector<16x48xbf16>
    %7 = vector.extract_strided_slice %6 {offsets = [0, 0], sizes = [16, 16], strides = [1, 1]} : vector<16x48xbf16> to vector<16x16xbf16>
    %8 = vector.shape_cast %7 : vector<16x16xbf16> to vector<2x8x16xbf16>
    %9 = vector.extract_strided_slice %6 {offsets = [0, 16], sizes = [16, 16], strides = [1, 1]} : vector<16x48xbf16> to vector<16x16xbf16>
    %10 = vector.shape_cast %9 : vector<16x16xbf16> to vector<2x8x16xbf16>
    %11 = vector.extract_strided_slice %6 {offsets = [0, 32], sizes = [16, 16], strides = [1, 1]} : vector<16x48xbf16> to vector<16x16xbf16>
    %12 = vector.shape_cast %11 : vector<16x16xbf16> to vector<2x8x16xbf16>
    %13 = vector.extract_strided_slice %1 {offsets = [0, 48], sizes = [16, 16], strides = [1, 1]} : vector<16x128xbf16> to vector<16x16xbf16>
    %14 = vector.extract_strided_slice %8 {offsets = [0, 0, 0], sizes = [2, 8, 4], strides = [1, 1, 1]} : vector<2x8x16xbf16> to vector<2x8x4xbf16>
    %15 = vector.extract_strided_slice %10 {offsets = [0, 0, 0], sizes = [2, 8, 4], strides = [1, 1, 1]} : vector<2x8x16xbf16> to vector<2x8x4xbf16>
    %16 = vector.extract_strided_slice %12 {offsets = [0, 0, 0], sizes = [2, 8, 4], strides = [1, 1, 1]} : vector<2x8x16xbf16> to vector<2x8x4xbf16>
    "tpu.trace_start"() <{level = 10 : i32, message = "bqa,bka->bqk"}> : () -> ()
    %cst_5 = arith.constant dense<0.000000e+00> : vector<2x8x8xf32>
    %17 = tpu.matmul %14, %15, %cst_5 {dimension_numbers = #tpu.dot_dimension_numbers<[2], [2], [1], [1], [0, 0, 0, 1, 1, 1], [0], [0]>} : vector<2x8x4xbf16>, vector<2x8x4xbf16>, vector<2x8x8xf32> -> vector<2x8x8xf32>
    "tpu.trace_stop"() : () -> ()
    %cst_6 = arith.constant dense<0xFF800000> : vector<2x8xf32>
    %18 = vector.multi_reduction <maximumf>, %17, %cst_6 [2] : vector<2x8x8xf32> to vector<2x8xf32>
    %19 = vector.shape_cast %18 : vector<2x8xf32> to vector<2x8x1xf32>
    %20 = vector.broadcast %19 : vector<2x8x1xf32> to vector<2x8x8xf32>
    %21 = arith.subf %17, %20 : vector<2x8x8xf32>
    %22 = math.exp %21 : vector<2x8x8xf32>
    %cst_7 = arith.constant dense<0.000000e+00> : vector<2x8xf32>
    %23 = vector.multi_reduction <add>, %22, %cst_7 [2] : vector<2x8x8xf32> to vector<2x8xf32>
    %24 = vector.shape_cast %23 : vector<2x8xf32> to vector<2x8x1xf32>
    %25 = arith.truncf %22 : vector<2x8x8xf32> to vector<2x8x8xbf16>
    "tpu.trace_start"() <{level = 10 : i32, message = "bqk,bka->bqa"}> : () -> ()
    %cst_8 = arith.constant dense<0.000000e+00> : vector<2x8x4xf32>
    %26 = tpu.matmul %25, %16, %cst_8 {dimension_numbers = #tpu.dot_dimension_numbers<[2], [1], [1], [2], [0, 0, 0, 1, 1, 2], [0], [0]>} : vector<2x8x8xbf16>, vector<2x8x4xbf16>, vector<2x8x4xf32> -> vector<2x8x4xf32>
    "tpu.trace_stop"() : () -> ()
    %27 = tpu.reciprocal %24 : vector<2x8x1xf32> -> vector<2x8x1xf32>
    %28 = vector.broadcast %27 : vector<2x8x1xf32> to vector<2x8x4xf32>
    %29 = arith.mulf %26, %28 : vector<2x8x4xf32>
    %30 = vector.extract_strided_slice %8 {offsets = [0, 0, 4], sizes = [2, 8, 4], strides = [1, 1, 1]} : vector<2x8x16xbf16> to vector<2x8x4xbf16>
    %31 = vector.extract_strided_slice %10 {offsets = [0, 0, 4], sizes = [2, 8, 4], strides = [1, 1, 1]} : vector<2x8x16xbf16> to vector<2x8x4xbf16>
    %32 = vector.extract_strided_slice %12 {offsets = [0, 0, 4], sizes = [2, 8, 4], strides = [1, 1, 1]} : vector<2x8x16xbf16> to vector<2x8x4xbf16>
    "tpu.trace_start"() <{level = 10 : i32, message = "bqa,bka->bqk"}> : () -> ()
    %cst_9 = arith.constant dense<0.000000e+00> : vector<2x8x8xf32>
    %33 = tpu.matmul %30, %31, %cst_9 {dimension_numbers = #tpu.dot_dimension_numbers<[2], [2], [1], [1], [0, 0, 0, 1, 1, 1], [0], [0]>} : vector<2x8x4xbf16>, vector<2x8x4xbf16>, vector<2x8x8xf32> -> vector<2x8x8xf32>
    "tpu.trace_stop"() : () -> ()
    %cst_10 = arith.constant dense<0xFF800000> : vector<2x8xf32>
    %34 = vector.multi_reduction <maximumf>, %33, %cst_10 [2] : vector<2x8x8xf32> to vector<2x8xf32>
    %35 = vector.shape_cast %34 : vector<2x8xf32> to vector<2x8x1xf32>
    %36 = vector.broadcast %35 : vector<2x8x1xf32> to vector<2x8x8xf32>
    %37 = arith.subf %33, %36 : vector<2x8x8xf32>
    %38 = math.exp %37 : vector<2x8x8xf32>
    %cst_11 = arith.constant dense<0.000000e+00> : vector<2x8xf32>
    %39 = vector.multi_reduction <add>, %38, %cst_11 [2] : vector<2x8x8xf32> to vector<2x8xf32>
    %40 = vector.shape_cast %39 : vector<2x8xf32> to vector<2x8x1xf32>
    %41 = arith.truncf %38 : vector<2x8x8xf32> to vector<2x8x8xbf16>
    "tpu.trace_start"() <{level = 10 : i32, message = "bqk,bka->bqa"}> : () -> ()
    %cst_12 = arith.constant dense<0.000000e+00> : vector<2x8x4xf32>
    %42 = tpu.matmul %41, %32, %cst_12 {dimension_numbers = #tpu.dot_dimension_numbers<[2], [1], [1], [2], [0, 0, 0, 1, 1, 2], [0], [0]>} : vector<2x8x8xbf16>, vector<2x8x4xbf16>, vector<2x8x4xf32> -> vector<2x8x4xf32>
    "tpu.trace_stop"() : () -> ()
    %43 = tpu.reciprocal %40 : vector<2x8x1xf32> -> vector<2x8x1xf32>
    %44 = vector.broadcast %43 : vector<2x8x1xf32> to vector<2x8x4xf32>
    %45 = arith.mulf %42, %44 : vector<2x8x4xf32>
    %46 = vector.extract_strided_slice %8 {offsets = [0, 0, 8], sizes = [2, 8, 4], strides = [1, 1, 1]} : vector<2x8x16xbf16> to vector<2x8x4xbf16>
    %47 = vector.extract_strided_slice %10 {offsets = [0, 0, 8], sizes = [2, 8, 4], strides = [1, 1, 1]} : vector<2x8x16xbf16> to vector<2x8x4xbf16>
    %48 = vector.extract_strided_slice %12 {offsets = [0, 0, 8], sizes = [2, 8, 4], strides = [1, 1, 1]} : vector<2x8x16xbf16> to vector<2x8x4xbf16>
    "tpu.trace_start"() <{level = 10 : i32, message = "bqa,bka->bqk"}> : () -> ()
    %cst_13 = arith.constant dense<0.000000e+00> : vector<2x8x8xf32>
    %49 = tpu.matmul %46, %47, %cst_13 {dimension_numbers = #tpu.dot_dimension_numbers<[2], [2], [1], [1], [0, 0, 0, 1, 1, 1], [0], [0]>} : vector<2x8x4xbf16>, vector<2x8x4xbf16>, vector<2x8x8xf32> -> vector<2x8x8xf32>
    "tpu.trace_stop"() : () -> ()
    %cst_14 = arith.constant dense<0xFF800000> : vector<2x8xf32>
    %50 = vector.multi_reduction <maximumf>, %49, %cst_14 [2] : vector<2x8x8xf32> to vector<2x8xf32>
    %51 = vector.shape_cast %50 : vector<2x8xf32> to vector<2x8x1xf32>
    %52 = vector.broadcast %51 : vector<2x8x1xf32> to vector<2x8x8xf32>
    %53 = arith.subf %49, %52 : vector<2x8x8xf32>
    %54 = math.exp %53 : vector<2x8x8xf32>
    %cst_15 = arith.constant dense<0.000000e+00> : vector<2x8xf32>
    %55 = vector.multi_reduction <add>, %54, %cst_15 [2] : vector<2x8x8xf32> to vector<2x8xf32>
    %56 = vector.shape_cast %55 : vector<2x8xf32> to vector<2x8x1xf32>
    %57 = arith.truncf %54 : vector<2x8x8xf32> to vector<2x8x8xbf16>
    "tpu.trace_start"() <{level = 10 : i32, message = "bqk,bka->bqa"}> : () -> ()
    %cst_16 = arith.constant dense<0.000000e+00> : vector<2x8x4xf32>
    %58 = tpu.matmul %57, %48, %cst_16 {dimension_numbers = #tpu.dot_dimension_numbers<[2], [1], [1], [2], [0, 0, 0, 1, 1, 2], [0], [0]>} : vector<2x8x8xbf16>, vector<2x8x4xbf16>, vector<2x8x4xf32> -> vector<2x8x4xf32>
    "tpu.trace_stop"() : () -> ()
    %59 = tpu.reciprocal %56 : vector<2x8x1xf32> -> vector<2x8x1xf32>
    %60 = vector.broadcast %59 : vector<2x8x1xf32> to vector<2x8x4xf32>
    %61 = arith.mulf %58, %60 : vector<2x8x4xf32>
    %62 = vector.extract_strided_slice %8 {offsets = [0, 0, 12], sizes = [2, 8, 4], strides = [1, 1, 1]} : vector<2x8x16xbf16> to vector<2x8x4xbf16>
    %63 = vector.extract_strided_slice %10 {offsets = [0, 0, 12], sizes = [2, 8, 4], strides = [1, 1, 1]} : vector<2x8x16xbf16> to vector<2x8x4xbf16>
    %64 = vector.extract_strided_slice %12 {offsets = [0, 0, 12], sizes = [2, 8, 4], strides = [1, 1, 1]} : vector<2x8x16xbf16> to vector<2x8x4xbf16>
    "tpu.trace_start"() <{level = 10 : i32, message = "bqa,bka->bqk"}> : () -> ()
    %cst_17 = arith.constant dense<0.000000e+00> : vector<2x8x8xf32>
    %65 = tpu.matmul %62, %63, %cst_17 {dimension_numbers = #tpu.dot_dimension_numbers<[2], [2], [1], [1], [0, 0, 0, 1, 1, 1], [0], [0]>} : vector<2x8x4xbf16>, vector<2x8x4xbf16>, vector<2x8x8xf32> -> vector<2x8x8xf32>
    "tpu.trace_stop"() : () -> ()
    %cst_18 = arith.constant dense<0xFF800000> : vector<2x8xf32>
    %66 = vector.multi_reduction <maximumf>, %65, %cst_18 [2] : vector<2x8x8xf32> to vector<2x8xf32>
    %67 = vector.shape_cast %66 : vector<2x8xf32> to vector<2x8x1xf32>
    %68 = vector.broadcast %67 : vector<2x8x1xf32> to vector<2x8x8xf32>
    %69 = arith.subf %65, %68 : vector<2x8x8xf32>
    %70 = math.exp %69 : vector<2x8x8xf32>
    %cst_19 = arith.constant dense<0.000000e+00> : vector<2x8xf32>
    %71 = vector.multi_reduction <add>, %70, %cst_19 [2] : vector<2x8x8xf32> to vector<2x8xf32>
    %72 = vector.shape_cast %71 : vector<2x8xf32> to vector<2x8x1xf32>
    %73 = arith.truncf %70 : vector<2x8x8xf32> to vector<2x8x8xbf16>
    "tpu.trace_start"() <{level = 10 : i32, message = "bqk,bka->bqa"}> : () -> ()
    %cst_20 = arith.constant dense<0.000000e+00> : vector<2x8x4xf32>
    %74 = tpu.matmul %73, %64, %cst_20 {dimension_numbers = #tpu.dot_dimension_numbers<[2], [1], [1], [2], [0, 0, 0, 1, 1, 2], [0], [0]>} : vector<2x8x8xbf16>, vector<2x8x4xbf16>, vector<2x8x4xf32> -> vector<2x8x4xf32>
    "tpu.trace_stop"() : () -> ()
    %75 = tpu.reciprocal %72 : vector<2x8x1xf32> -> vector<2x8x1xf32>
    %76 = vector.broadcast %75 : vector<2x8x1xf32> to vector<2x8x4xf32>
    %77 = arith.mulf %74, %76 : vector<2x8x4xf32>
    %78 = tpu.concatenate %29, %45, %61, %77 in 2 : vector<2x8x4xf32>, vector<2x8x4xf32>, vector<2x8x4xf32>, vector<2x8x4xf32> -> vector<2x8x16xf32>
    %79 = vector.shape_cast %78 : vector<2x8x16xf32> to vector<16x16xf32>
    %80 = arith.truncf %79 : vector<16x16xf32> to vector<16x16xbf16>
    %cst_21 = arith.constant dense<0.000000e+00> : vector<16x16xf32>
    %81 = tpu.matmul %80, %13, %cst_21 {dimension_numbers = #tpu.dot_dimension_numbers<[1], [0], [0], [1], [0, 0, 1, 1], [], []>} : vector<16x16xbf16>, vector<16x16xbf16>, vector<16x16xf32> -> vector<16x16xf32>
    %82 = arith.addf %81, %0 : vector<16x16xf32>
    %83 = vector.extract_strided_slice %2 {offsets = [0, 0], sizes = [1, 16], strides = [1, 1]} : vector<6x16xf32> to vector<1x16xf32>
    %84 = vector.extract_strided_slice %2 {offsets = [1, 0], sizes = [1, 16], strides = [1, 1]} : vector<6x16xf32> to vector<1x16xf32>
    %cst_22 = arith.constant dense<0.000000e+00> : vector<16xf32>
    %85 = vector.multi_reduction <add>, %82, %cst_22 [1] : vector<16x16xf32> to vector<16xf32>
    %86 = vector.shape_cast %85 : vector<16xf32> to vector<16x1xf32>
    %cst_23 = arith.constant 1.600000e+01 : f32
    %87 = vector.broadcast %cst_23 : f32 to vector<16x1xf32>
    %88 = arith.divf %86, %87 : vector<16x1xf32>
    %89 = vector.broadcast %88 : vector<16x1xf32> to vector<16x16xf32>
    %90 = arith.subf %82, %89 : vector<16x16xf32>
    %91 = arith.mulf %90, %90 : vector<16x16xf32>
    %cst_24 = arith.constant dense<0.000000e+00> : vector<16xf32>
    %92 = vector.multi_reduction <add>, %91, %cst_24 [1] : vector<16x16xf32> to vector<16xf32>
    %93 = vector.shape_cast %92 : vector<16xf32> to vector<16x1xf32>
    %cst_25 = arith.constant 1.600000e+01 : f32
    %94 = vector.broadcast %cst_25 : f32 to vector<16x1xf32>
    %95 = arith.divf %93, %94 : vector<16x1xf32>
    %cst_26 = arith.constant 9.99999974E-6 : f32
    %96 = vector.broadcast %cst_26 : f32 to vector<16x1xf32>
    %97 = arith.addf %95, %96 : vector<16x1xf32>
    %98 = math.rsqrt %97 : vector<16x1xf32>
    %99 = vector.broadcast %98 : vector<16x1xf32> to vector<16x16xf32>
    %100 = arith.mulf %90, %99 : vector<16x16xf32>
    %101 = vector.broadcast %83 : vector<1x16xf32> to vector<16x16xf32>
    %102 = arith.mulf %100, %101 : vector<16x16xf32>
    %103 = vector.broadcast %84 : vector<1x16xf32> to vector<16x16xf32>
    %104 = arith.addf %102, %103 : vector<16x16xf32>
    %105 = arith.truncf %104 : vector<16x16xf32> to vector<16x16xbf16>
    %106 = vector.extract_strided_slice %1 {offsets = [0, 64], sizes = [16, 48], strides = [1, 1]} : vector<16x128xbf16> to vector<16x48xbf16>
    %cst_27 = arith.constant dense<0.000000e+00> : vector<16x48xf32>
    %107 = tpu.matmul %105, %106, %cst_27 {dimension_numbers = #tpu.dot_dimension_numbers<[1], [0], [0], [1], [0, 0, 1, 1], [], []>} : vector<16x16xbf16>, vector<16x48xbf16>, vector<16x48xf32> -> vector<16x48xf32>
    %108 = arith.truncf %107 : vector<16x48xf32> to vector<16x48xbf16>
    %109 = vector.extract_strided_slice %108 {offsets = [0, 0], sizes = [16, 16], strides = [1, 1]} : vector<16x48xbf16> to vector<16x16xbf16>
    %110 = vector.shape_cast %109 : vector<16x16xbf16> to vector<2x8x16xbf16>
    %111 = vector.extract_strided_slice %108 {offsets = [0, 16], sizes = [16, 16], strides = [1, 1]} : vector<16x48xbf16> to vector<16x16xbf16>
    %112 = vector.shape_cast %111 : vector<16x16xbf16> to vector<2x8x16xbf16>
    %113 = vector.extract_strided_slice %108 {offsets = [0, 32], sizes = [16, 16], strides = [1, 1]} : vector<16x48xbf16> to vector<16x16xbf16>
    %114 = vector.shape_cast %113 : vector<16x16xbf16> to vector<2x8x16xbf16>
    %115 = vector.extract_strided_slice %1 {offsets = [0, 112], sizes = [16, 16], strides = [1, 1]} : vector<16x128xbf16> to vector<16x16xbf16>
    %116 = vector.extract_strided_slice %110 {offsets = [0, 0, 0], sizes = [2, 8, 4], strides = [1, 1, 1]} : vector<2x8x16xbf16> to vector<2x8x4xbf16>
    %117 = vector.extract_strided_slice %112 {offsets = [0, 0, 0], sizes = [2, 8, 4], strides = [1, 1, 1]} : vector<2x8x16xbf16> to vector<2x8x4xbf16>
    %118 = vector.extract_strided_slice %114 {offsets = [0, 0, 0], sizes = [2, 8, 4], strides = [1, 1, 1]} : vector<2x8x16xbf16> to vector<2x8x4xbf16>
    "tpu.trace_start"() <{level = 10 : i32, message = "bqa,bka->bqk"}> : () -> ()
    %cst_28 = arith.constant dense<0.000000e+00> : vector<2x8x8xf32>
    %119 = tpu.matmul %116, %117, %cst_28 {dimension_numbers = #tpu.dot_dimension_numbers<[2], [2], [1], [1], [0, 0, 0, 1, 1, 1], [0], [0]>} : vector<2x8x4xbf16>, vector<2x8x4xbf16>, vector<2x8x8xf32> -> vector<2x8x8xf32>
    "tpu.trace_stop"() : () -> ()
    %cst_29 = arith.constant dense<0xFF800000> : vector<2x8xf32>
    %120 = vector.multi_reduction <maximumf>, %119, %cst_29 [2] : vector<2x8x8xf32> to vector<2x8xf32>
    %121 = vector.shape_cast %120 : vector<2x8xf32> to vector<2x8x1xf32>
    %122 = vector.broadcast %121 : vector<2x8x1xf32> to vector<2x8x8xf32>
    %123 = arith.subf %119, %122 : vector<2x8x8xf32>
    %124 = math.exp %123 : vector<2x8x8xf32>
    %cst_30 = arith.constant dense<0.000000e+00> : vector<2x8xf32>
    %125 = vector.multi_reduction <add>, %124, %cst_30 [2] : vector<2x8x8xf32> to vector<2x8xf32>
    %126 = vector.shape_cast %125 : vector<2x8xf32> to vector<2x8x1xf32>
    %127 = arith.truncf %124 : vector<2x8x8xf32> to vector<2x8x8xbf16>
    "tpu.trace_start"() <{level = 10 : i32, message = "bqk,bka->bqa"}> : () -> ()
    %cst_31 = arith.constant dense<0.000000e+00> : vector<2x8x4xf32>
    %128 = tpu.matmul %127, %118, %cst_31 {dimension_numbers = #tpu.dot_dimension_numbers<[2], [1], [1], [2], [0, 0, 0, 1, 1, 2], [0], [0]>} : vector<2x8x8xbf16>, vector<2x8x4xbf16>, vector<2x8x4xf32> -> vector<2x8x4xf32>
    "tpu.trace_stop"() : () -> ()
    %129 = tpu.reciprocal %126 : vector<2x8x1xf32> -> vector<2x8x1xf32>
    %130 = vector.broadcast %129 : vector<2x8x1xf32> to vector<2x8x4xf32>
    %131 = arith.mulf %128, %130 : vector<2x8x4xf32>
    %132 = vector.extract_strided_slice %110 {offsets = [0, 0, 4], sizes = [2, 8, 4], strides = [1, 1, 1]} : vector<2x8x16xbf16> to vector<2x8x4xbf16>
    %133 = vector.extract_strided_slice %112 {offsets = [0, 0, 4], sizes = [2, 8, 4], strides = [1, 1, 1]} : vector<2x8x16xbf16> to vector<2x8x4xbf16>
    %134 = vector.extract_strided_slice %114 {offsets = [0, 0, 4], sizes = [2, 8, 4], strides = [1, 1, 1]} : vector<2x8x16xbf16> to vector<2x8x4xbf16>
    "tpu.trace_start"() <{level = 10 : i32, message = "bqa,bka->bqk"}> : () -> ()
    %cst_32 = arith.constant dense<0.000000e+00> : vector<2x8x8xf32>
    %135 = tpu.matmul %132, %133, %cst_32 {dimension_numbers = #tpu.dot_dimension_numbers<[2], [2], [1], [1], [0, 0, 0, 1, 1, 1], [0], [0]>} : vector<2x8x4xbf16>, vector<2x8x4xbf16>, vector<2x8x8xf32> -> vector<2x8x8xf32>
    "tpu.trace_stop"() : () -> ()
    %cst_33 = arith.constant dense<0xFF800000> : vector<2x8xf32>
    %136 = vector.multi_reduction <maximumf>, %135, %cst_33 [2] : vector<2x8x8xf32> to vector<2x8xf32>
    %137 = vector.shape_cast %136 : vector<2x8xf32> to vector<2x8x1xf32>
    %138 = vector.broadcast %137 : vector<2x8x1xf32> to vector<2x8x8xf32>
    %139 = arith.subf %135, %138 : vector<2x8x8xf32>
    %140 = math.exp %139 : vector<2x8x8xf32>
    %cst_34 = arith.constant dense<0.000000e+00> : vector<2x8xf32>
    %141 = vector.multi_reduction <add>, %140, %cst_34 [2] : vector<2x8x8xf32> to vector<2x8xf32>
    %142 = vector.shape_cast %141 : vector<2x8xf32> to vector<2x8x1xf32>
    %143 = arith.truncf %140 : vector<2x8x8xf32> to vector<2x8x8xbf16>
    "tpu.trace_start"() <{level = 10 : i32, message = "bqk,bka->bqa"}> : () -> ()
    %cst_35 = arith.constant dense<0.000000e+00> : vector<2x8x4xf32>
    %144 = tpu.matmul %143, %134, %cst_35 {dimension_numbers = #tpu.dot_dimension_numbers<[2], [1], [1], [2], [0, 0, 0, 1, 1, 2], [0], [0]>} : vector<2x8x8xbf16>, vector<2x8x4xbf16>, vector<2x8x4xf32> -> vector<2x8x4xf32>
    "tpu.trace_stop"() : () -> ()
    %145 = tpu.reciprocal %142 : vector<2x8x1xf32> -> vector<2x8x1xf32>
    %146 = vector.broadcast %145 : vector<2x8x1xf32> to vector<2x8x4xf32>
    %147 = arith.mulf %144, %146 : vector<2x8x4xf32>
    %148 = vector.extract_strided_slice %110 {offsets = [0, 0, 8], sizes = [2, 8, 4], strides = [1, 1, 1]} : vector<2x8x16xbf16> to vector<2x8x4xbf16>
    %149 = vector.extract_strided_slice %112 {offsets = [0, 0, 8], sizes = [2, 8, 4], strides = [1, 1, 1]} : vector<2x8x16xbf16> to vector<2x8x4xbf16>
    %150 = vector.extract_strided_slice %114 {offsets = [0, 0, 8], sizes = [2, 8, 4], strides = [1, 1, 1]} : vector<2x8x16xbf16> to vector<2x8x4xbf16>
    "tpu.trace_start"() <{level = 10 : i32, message = "bqa,bka->bqk"}> : () -> ()
    %cst_36 = arith.constant dense<0.000000e+00> : vector<2x8x8xf32>
    %151 = tpu.matmul %148, %149, %cst_36 {dimension_numbers = #tpu.dot_dimension_numbers<[2], [2], [1], [1], [0, 0, 0, 1, 1, 1], [0], [0]>} : vector<2x8x4xbf16>, vector<2x8x4xbf16>, vector<2x8x8xf32> -> vector<2x8x8xf32>
    "tpu.trace_stop"() : () -> ()
    %cst_37 = arith.constant dense<0xFF800000> : vector<2x8xf32>
    %152 = vector.multi_reduction <maximumf>, %151, %cst_37 [2] : vector<2x8x8xf32> to vector<2x8xf32>
    %153 = vector.shape_cast %152 : vector<2x8xf32> to vector<2x8x1xf32>
    %154 = vector.broadcast %153 : vector<2x8x1xf32> to vector<2x8x8xf32>
    %155 = arith.subf %151, %154 : vector<2x8x8xf32>
    %156 = math.exp %155 : vector<2x8x8xf32>
    %cst_38 = arith.constant dense<0.000000e+00> : vector<2x8xf32>
    %157 = vector.multi_reduction <add>, %156, %cst_38 [2] : vector<2x8x8xf32> to vector<2x8xf32>
    %158 = vector.shape_cast %157 : vector<2x8xf32> to vector<2x8x1xf32>
    %159 = arith.truncf %156 : vector<2x8x8xf32> to vector<2x8x8xbf16>
    "tpu.trace_start"() <{level = 10 : i32, message = "bqk,bka->bqa"}> : () -> ()
    %cst_39 = arith.constant dense<0.000000e+00> : vector<2x8x4xf32>
    %160 = tpu.matmul %159, %150, %cst_39 {dimension_numbers = #tpu.dot_dimension_numbers<[2], [1], [1], [2], [0, 0, 0, 1, 1, 2], [0], [0]>} : vector<2x8x8xbf16>, vector<2x8x4xbf16>, vector<2x8x4xf32> -> vector<2x8x4xf32>
    "tpu.trace_stop"() : () -> ()
    %161 = tpu.reciprocal %158 : vector<2x8x1xf32> -> vector<2x8x1xf32>
    %162 = vector.broadcast %161 : vector<2x8x1xf32> to vector<2x8x4xf32>
    %163 = arith.mulf %160, %162 : vector<2x8x4xf32>
    %164 = vector.extract_strided_slice %110 {offsets = [0, 0, 12], sizes = [2, 8, 4], strides = [1, 1, 1]} : vector<2x8x16xbf16> to vector<2x8x4xbf16>
    %165 = vector.extract_strided_slice %112 {offsets = [0, 0, 12], sizes = [2, 8, 4], strides = [1, 1, 1]} : vector<2x8x16xbf16> to vector<2x8x4xbf16>
    %166 = vector.extract_strided_slice %114 {offsets = [0, 0, 12], sizes = [2, 8, 4], strides = [1, 1, 1]} : vector<2x8x16xbf16> to vector<2x8x4xbf16>
    "tpu.trace_start"() <{level = 10 : i32, message = "bqa,bka->bqk"}> : () -> ()
    %cst_40 = arith.constant dense<0.000000e+00> : vector<2x8x8xf32>
    %167 = tpu.matmul %164, %165, %cst_40 {dimension_numbers = #tpu.dot_dimension_numbers<[2], [2], [1], [1], [0, 0, 0, 1, 1, 1], [0], [0]>} : vector<2x8x4xbf16>, vector<2x8x4xbf16>, vector<2x8x8xf32> -> vector<2x8x8xf32>
    "tpu.trace_stop"() : () -> ()
    %cst_41 = arith.constant dense<0xFF800000> : vector<2x8xf32>
    %168 = vector.multi_reduction <maximumf>, %167, %cst_41 [2] : vector<2x8x8xf32> to vector<2x8xf32>
    %169 = vector.shape_cast %168 : vector<2x8xf32> to vector<2x8x1xf32>
    %170 = vector.broadcast %169 : vector<2x8x1xf32> to vector<2x8x8xf32>
    %171 = arith.subf %167, %170 : vector<2x8x8xf32>
    %172 = math.exp %171 : vector<2x8x8xf32>
    %cst_42 = arith.constant dense<0.000000e+00> : vector<2x8xf32>
    %173 = vector.multi_reduction <add>, %172, %cst_42 [2] : vector<2x8x8xf32> to vector<2x8xf32>
    %174 = vector.shape_cast %173 : vector<2x8xf32> to vector<2x8x1xf32>
    %175 = arith.truncf %172 : vector<2x8x8xf32> to vector<2x8x8xbf16>
    "tpu.trace_start"() <{level = 10 : i32, message = "bqk,bka->bqa"}> : () -> ()
    %cst_43 = arith.constant dense<0.000000e+00> : vector<2x8x4xf32>
    %176 = tpu.matmul %175, %166, %cst_43 {dimension_numbers = #tpu.dot_dimension_numbers<[2], [1], [1], [2], [0, 0, 0, 1, 1, 2], [0], [0]>} : vector<2x8x8xbf16>, vector<2x8x4xbf16>, vector<2x8x4xf32> -> vector<2x8x4xf32>
    "tpu.trace_stop"() : () -> ()
    %177 = tpu.reciprocal %174 : vector<2x8x1xf32> -> vector<2x8x1xf32>
    %178 = vector.broadcast %177 : vector<2x8x1xf32> to vector<2x8x4xf32>
    %179 = arith.mulf %176, %178 : vector<2x8x4xf32>
    %180 = tpu.concatenate %131, %147, %163, %179 in 2 : vector<2x8x4xf32>, vector<2x8x4xf32>, vector<2x8x4xf32>, vector<2x8x4xf32> -> vector<2x8x16xf32>
    %181 = vector.shape_cast %180 : vector<2x8x16xf32> to vector<16x16xf32>
    %182 = arith.truncf %181 : vector<16x16xf32> to vector<16x16xbf16>
    %cst_44 = arith.constant dense<0.000000e+00> : vector<16x16xf32>
    %183 = tpu.matmul %182, %115, %cst_44 {dimension_numbers = #tpu.dot_dimension_numbers<[1], [0], [0], [1], [0, 0, 1, 1], [], []>} : vector<16x16xbf16>, vector<16x16xbf16>, vector<16x16xf32> -> vector<16x16xf32>
    %184 = arith.addf %183, %104 : vector<16x16xf32>
    %185 = vector.extract_strided_slice %2 {offsets = [2, 0], sizes = [1, 16], strides = [1, 1]} : vector<6x16xf32> to vector<1x16xf32>
    %186 = vector.extract_strided_slice %2 {offsets = [3, 0], sizes = [1, 16], strides = [1, 1]} : vector<6x16xf32> to vector<1x16xf32>
    %cst_45 = arith.constant dense<0.000000e+00> : vector<16xf32>
    %187 = vector.multi_reduction <add>, %184, %cst_45 [1] : vector<16x16xf32> to vector<16xf32>
    %188 = vector.shape_cast %187 : vector<16xf32> to vector<16x1xf32>
    %cst_46 = arith.constant 1.600000e+01 : f32
    %189 = vector.broadcast %cst_46 : f32 to vector<16x1xf32>
    %190 = arith.divf %188, %189 : vector<16x1xf32>
    %191 = vector.broadcast %190 : vector<16x1xf32> to vector<16x16xf32>
    %192 = arith.subf %184, %191 : vector<16x16xf32>
    %193 = arith.mulf %192, %192 : vector<16x16xf32>
    %cst_47 = arith.constant dense<0.000000e+00> : vector<16xf32>
    %194 = vector.multi_reduction <add>, %193, %cst_47 [1] : vector<16x16xf32> to vector<16xf32>
    %195 = vector.shape_cast %194 : vector<16xf32> to vector<16x1xf32>
    %cst_48 = arith.constant 1.600000e+01 : f32
    %196 = vector.broadcast %cst_48 : f32 to vector<16x1xf32>
    %197 = arith.divf %195, %196 : vector<16x1xf32>
    %cst_49 = arith.constant 9.99999974E-6 : f32
    %198 = vector.broadcast %cst_49 : f32 to vector<16x1xf32>
    %199 = arith.addf %197, %198 : vector<16x1xf32>
    %200 = math.rsqrt %199 : vector<16x1xf32>
    %201 = vector.broadcast %200 : vector<16x1xf32> to vector<16x16xf32>
    %202 = arith.mulf %192, %201 : vector<16x16xf32>
    %203 = vector.broadcast %185 : vector<1x16xf32> to vector<16x16xf32>
    %204 = arith.mulf %202, %203 : vector<16x16xf32>
    %205 = vector.broadcast %186 : vector<1x16xf32> to vector<16x16xf32>
    %206 = arith.addf %204, %205 : vector<16x16xf32>
    %207 = arith.truncf %206 : vector<16x16xf32> to vector<16x16xbf16>
    %c0_50 = arith.constant 0 : index
    %c0_51 = arith.constant 0 : index
    %208 = vector.load %arg3[%c0_50, %c0_51] : memref<16x32xbf16, #tpu.memory_space<vmem>>, vector<16x32xbf16>
    %cst_52 = arith.constant dense<0.000000e+00> : vector<16x32xf32>
    %209 = tpu.matmul %207, %208, %cst_52 {dimension_numbers = #tpu.dot_dimension_numbers<[1], [0], [0], [1], [0, 0, 1, 1], [], []>} : vector<16x16xbf16>, vector<16x32xbf16>, vector<16x32xf32> -> vector<16x32xf32>
    %c0_53 = arith.constant 0 : index
    %c0_54 = arith.constant 0 : index
    %210 = vector.load %arg4[%c0_53, %c0_54] : memref<1x32xf32, #tpu.memory_space<vmem>>, vector<1x32xf32>
    %211 = vector.broadcast %210 : vector<1x32xf32> to vector<16x32xf32>
    %212 = arith.addf %209, %211 : vector<16x32xf32>
    %cst_55 = arith.constant 0.000000e+00 : f32
    %213 = vector.broadcast %cst_55 : f32 to vector<16x32xf32>
    %214 = arith.maximumf %212, %213 : vector<16x32xf32>
    %215 = arith.truncf %214 : vector<16x32xf32> to vector<16x32xbf16>
    %c0_56 = arith.constant 0 : index
    %c0_57 = arith.constant 0 : index
    %216 = vector.load %arg5[%c0_56, %c0_57] : memref<32x16xbf16, #tpu.memory_space<vmem>>, vector<32x16xbf16>
    %cst_58 = arith.constant dense<0.000000e+00> : vector<16x16xf32>
    %217 = tpu.matmul %215, %216, %cst_58 {dimension_numbers = #tpu.dot_dimension_numbers<[1], [0], [0], [1], [0, 0, 1, 1], [], []>} : vector<16x32xbf16>, vector<32x16xbf16>, vector<16x16xf32> -> vector<16x16xf32>
    %c0_59 = arith.constant 0 : index
    %c0_60 = arith.constant 0 : index
    %218 = vector.load %arg6[%c0_59, %c0_60] : memref<1x16xf32, #tpu.memory_space<vmem>>, vector<1x16xf32>
    %219 = vector.broadcast %218 : vector<1x16xf32> to vector<16x16xf32>
    %220 = arith.addf %217, %219 : vector<16x16xf32>
    %221 = arith.addf %220, %206 : vector<16x16xf32>
    %222 = vector.extract_strided_slice %2 {offsets = [4, 0], sizes = [1, 16], strides = [1, 1]} : vector<6x16xf32> to vector<1x16xf32>
    %223 = vector.extract_strided_slice %2 {offsets = [5, 0], sizes = [1, 16], strides = [1, 1]} : vector<6x16xf32> to vector<1x16xf32>
    %cst_61 = arith.constant dense<0.000000e+00> : vector<16xf32>
    %224 = vector.multi_reduction <add>, %221, %cst_61 [1] : vector<16x16xf32> to vector<16xf32>
    %225 = vector.shape_cast %224 : vector<16xf32> to vector<16x1xf32>
    %cst_62 = arith.constant 1.600000e+01 : f32
    %226 = vector.broadcast %cst_62 : f32 to vector<16x1xf32>
    %227 = arith.divf %225, %226 : vector<16x1xf32>
    %228 = vector.broadcast %227 : vector<16x1xf32> to vector<16x16xf32>
    %229 = arith.subf %221, %228 : vector<16x16xf32>
    %230 = arith.mulf %229, %229 : vector<16x16xf32>
    %cst_63 = arith.constant dense<0.000000e+00> : vector<16xf32>
    %231 = vector.multi_reduction <add>, %230, %cst_63 [1] : vector<16x16xf32> to vector<16xf32>
    %232 = vector.shape_cast %231 : vector<16xf32> to vector<16x1xf32>
    %cst_64 = arith.constant 1.600000e+01 : f32
    %233 = vector.broadcast %cst_64 : f32 to vector<16x1xf32>
    %234 = arith.divf %232, %233 : vector<16x1xf32>
    %cst_65 = arith.constant 9.99999974E-6 : f32
    %235 = vector.broadcast %cst_65 : f32 to vector<16x1xf32>
    %236 = arith.addf %234, %235 : vector<16x1xf32>
    %237 = math.rsqrt %236 : vector<16x1xf32>
    %238 = vector.broadcast %237 : vector<16x1xf32> to vector<16x16xf32>
    %239 = arith.mulf %229, %238 : vector<16x16xf32>
    %240 = vector.broadcast %222 : vector<1x16xf32> to vector<16x16xf32>
    %241 = arith.mulf %239, %240 : vector<16x16xf32>
    %242 = vector.broadcast %223 : vector<1x16xf32> to vector<16x16xf32>
    %243 = arith.addf %241, %242 : vector<16x16xf32>
    %c0_66 = arith.constant 0 : index
    %c0_67 = arith.constant 0 : index
    %244 = vector.load %arg8[%c0_66, %c0_67] : memref<16x16xf32, #tpu.memory_space<vmem>>, vector<16x16xf32>
    tpu.vector_store %arg8[%c0_66, %c0_67], %243 {strides = array<i32>} : memref<16x16xf32, #tpu.memory_space<vmem>>, vector<16x16xf32>,
    return
  }
  func.func @transform_0(%arg0: i32) -> (i32, i32) {
    %c0_i32 = arith.constant 0 : i32
    %c0_i32_0 = arith.constant 0 : i32
    return %arg0, %c0_i32 : i32, i32
  }
  func.func @transform_1(%arg0: i32) -> (i32, i32) {
    %c0_i32 = arith.constant 0 : i32
    %c0_i32_0 = arith.constant 0 : i32
    %c0_i32_1 = arith.constant 0 : i32
    return %c0_i32, %c0_i32_0 : i32, i32
  }
  func.func @transform_2(%arg0: i32) -> (i32, i32) {
    %c0_i32 = arith.constant 0 : i32
    %c0_i32_0 = arith.constant 0 : i32
    %c0_i32_1 = arith.constant 0 : i32
    return %c0_i32, %c0_i32_0 : i32, i32
  }
  func.func @transform_3(%arg0: i32) -> (i32, i32) {
    %c0_i32 = arith.constant 0 : i32
    %c0_i32_0 = arith.constant 0 : i32
    %c0_i32_1 = arith.constant 0 : i32
    return %c0_i32, %c0_i32_0 : i32, i32
  }
  func.func @transform_4(%arg0: i32) -> (i32, i32) {
    %c0_i32 = arith.constant 0 : i32
    %c0_i32_0 = arith.constant 0 : i32
    %c0_i32_1 = arith.constant 0 : i32
    return %c0_i32, %c0_i32_0 : i32, i32
  }
  func.func @transform_5(%arg0: i32) -> (i32, i32) {
    %c0_i32 = arith.constant 0 : i32
    %c0_i32_0 = arith.constant 0 : i32
    %c0_i32_1 = arith.constant 0 : i32
    return %c0_i32, %c0_i32_0 : i32, i32
  }
  func.func @transform_6(%arg0: i32) -> (i32, i32) {
    %c0_i32 = arith.constant 0 : i32
    %c0_i32_0 = arith.constant 0 : i32
    %c0_i32_1 = arith.constant 0 : i32
    return %c0_i32, %c0_i32_0 : i32, i32
  }
  func.func @transform_7(%arg0: i32) -> (i32, i32) {
    %c0_i32 = arith.constant 0 : i32
    %c0_i32_0 = arith.constant 0 : i32
    return %arg0, %c0_i32 : i32, i32
  }
}

</mosaic_0001>

<bundles_post_ra>
// kernel: tpu_custom_call.1
= control target key start
LH: loop header
LB: loop body
LE: loop exit
PB: predicated region body
PF: predicated region fallthrough
CT: control target
= control target key end

     0   :  { %12 = vsyncpa [#allocation3], 0  ;;  %s3457_s0 = inlined_call_operand.vmem [shape: f32[16,16], index: 0, kind: input, shape index: {}]   ;;  %s3458_s1 = inlined_call_operand.vmem [shape: bf16[16,128], index: 1, kind: input, shape index: {}]   ;;  %s3459_s2 = inlined_call_operand.hbm [shape: bf16[16,32], index: 2, kind: input, shape index: {}]   ;;  %s3460_s3 = inlined_call_operand.vmem [shape: f32[1,32], index: 3, kind: input, shape index: {}]   ;;  %s3461_s4 = inlined_call_operand.vmem [shape: bf16[32,16], index: 4, kind: input, shape index: {}]   ;;  %s3462_s5 = inlined_call_operand.vmem [shape: f32[1,16], index: 5, kind: input, shape index: {}]   ;;  %s3463_s6 = inlined_call_operand.vmem [shape: f32[6,16], index: 6, kind: input, shape index: {}]   ;;  %s3464_s7 = inlined_call_operand.hbm [shape: f32[16,16], index: 7, kind: output, shape index: {}]  }
   0x1   :  { %13 = vsyncpa [#allocation4], 0  ;;  %s2878_s24 = smov [#allocation2]   ;;  %s2830_s28 = scalar_lea.hbm %s3459_s2, 128 }
   0x2   :  { %s23_s25 = sshll.u32 %s2878_s24, 4  ;;  %p2831_p0 = scmp.ne.s32.totalorder %s3459_s2, %s2830_s28  ;;  %s24_s25 = int_to_ptr.vmem [resolvable:$true] %s23_s25 }
   0x3   :  { %p2834_p1 = scmp.lt.u32.totalorder %s2830_s28, %s3459_s2 }
   0x5   :  { %p2836_p2 = pnand %p2834_p1, %p2831_p0 }
   0x7   :  { %2839 = shalt.err (!%p2836_p2)
}
   0x8   :  { %s2840_s10 = scalar_lea.vmem %s24_s25, 128  ;;  %p2845_p4 = scmp.lt.s32.totalorder %s24_s25, %s24_s25 }
   0x9   :  { %p2841_p3 = scmp.ne.s32.totalorder %s24_s25, %s2840_s10  ;;  %p2846_p5 = scmp.lt.s32.totalorder %s2840_s10, %s2840_s10 }
   0xb   :  { %p2847_p6 = por %p2846_p5, %p2845_p4 }
   0xd   :  { %p2848_p7 = pnand %p2847_p6, %p2841_p3 }
   0xf   :  { %2851 = shalt.err (!%p2848_p7)
}
  0x10   :  { %s2879_s11 = smov 64   ;;  %s2880_s12 = smov 4  }
  0x11   :  { %29 = dma.hbm_to_vmem [thread:$0]  %s3459_s2, 128, %s24_s25, [#allocation3], %s2879_s11, %s2879_s11, %s2880_s12  }
  0x12   :  { %2874 = dma.done.wait [#allocation3], 128  }
  0x13   :  { %2875 = vsyncadd [#allocation3], 4294967168  ;;  %v2881_v0 = vmov 0.0   ;;  %vm2882_vm0 = vmmov 0   ;;  %v2964_v1 = vld [vmem:[%s3458_s1] sm:$0xff]   ;;  %v2974_v3 = vld [vmem:[%s3457_s0 + $0x8] sm:$0xff] }
  0x14   :  { %2467 = vmatprep.subr.bf16.mxu0 %v2881_v0  ;;  %2469 = vmatprep.mubr.msk.bf16.mxu0 %vm2882_vm0, %v2881_v0  ;;  %v2969_v2 = vld [vmem:[%s3457_s0] sm:$0xff]  ;;  %vm54_vm1 = vcmask 130048   ;;  %s2883_s0 = smov 112   ;;  %s2884_s20 = smov 96   ;;  %vm107_vm2 = vcmask 31744   ;;  %vm228_vm3 = vcmask 1043456  }
  0x15   :  { %2473 = vmatprep.subr.bf16.mxu1 %v2881_v0  ;;  %2475 = vmatprep.mubr.msk.bf16.mxu1 %vm2882_vm0, %v2881_v0  ;;  %v47_v4 = vpack.c.bf16 %v2974_v3, %v2969_v2  ;;  %s2885_s21 = smov 108   ;;  %s2886_s22 = smov 124   ;;  %vm202_vm4 = vcmask 64512   ;;  %vm1012_vm5 = vcmask 97280   ;;  %vm2234_vm6 = vcmask 261120  }
  0x16   :  { %2468 = vmatpush3.bf16.msra.mxu0 %v2964_v1  ;;  %s2887_s23 = smov 92   ;;  %s2888_s24 = smov 104  }
  0x17   :  { %2479 = vmatprep.subr.bf16.mxu0 %v2881_v0  ;;  %s2889_s25 = smov 120   ;;  %s2890_s26 = smov 88  }
  0x18   :  { %s2891_s27 = smov 100   ;;  %s2892_s28 = smov 116  }
  0x19   :  { %2470 = vmatmul.mubr.msk.bf16.vlgmr.msra.gmra.mrb[0].mxu0 %vm54_vm1, %v47_v4  ;;  %s2893_s29 = smov 84   ;;  %s2894_s30 = smov 8  }
  0x1a   :  { %2481 = vmatprep.mubr.msk.bf16.mxu0 %vm2882_vm0, %v2881_v0  ;;  %s2895_s8 = smov 80   ;;  %s2896_s9 = smov 12  }
  0xec   :  { %v92_v5 = vpop.f32.mrb[0].mxu0 }
  0xed   :  { %v2983_v6 = vpack.c.bf16 %v92_v5, %v92_v5  ;;  %v2471_v7 = vpop.f32.mrb[1].mxu0 }
  0xee   :  { %v95_v8 = vpop.f32.mrb[2].mxu0 }
  0xef   :  { %105 = vrot.lane.b32.xlu0 %v2983_v6, %s2883_s0  ;;  %v2472_v9 = vpop.f32.mrb[3].mxu0  ;;  %v2987_v10 = vpack.c.bf16 %v95_v8, %v95_v8 }
  0xf3   :  { %154 = vrot.lane.b32.xlu0 %v2987_v10, %s2883_s0 }
  0xf7   :  { %223 = vrot.lane.b32.xlu0 %v2983_v6, %s2884_s20 }
  0xfb   :  { %326 = vrot.lane.b32.xlu0 %v2983_v6, %s2885_s21 }
  0xff   :  { %376 = vrot.lane.b32.xlu0 %v2987_v10, %s2885_s21 }
 0x103   :  { %324 = vrot.lane.b32.xlu0 %v2983_v6, %s2886_s22 }
 0x107   :  { %374 = vrot.lane.b32.xlu0 %v2987_v10, %s2886_s22 }
 0x10b   :  { %444 = vrot.lane.b32.xlu0 %v2983_v6, %s2887_s23 }
 0x161   :  { %v106_v11 = vpop.permute.xlu0 %105 }
 0x162   :  { %v112_v12 = vsel %vm107_vm2, %v106_v11, 0 }
 0x163   :  { %2474 = vmatpush3.bf16.xpose.msra.mxu1 %v112_v12 }
 0x164   :  { %2485 = vmatprep.subr.bf16.mxu1 %v2881_v0 }
 0x165   :  { %v155_v13 = vpop.permute.xlu0 %154 }
 0x166   :  { %v160_v14 = vsel %vm107_vm2, %v155_v13, 0 }
 0x167   :  { %2480 = vmatpush3.bf16.xpose.msra.mxu0 %v160_v14 }
 0x168   :  { %2491 = vmatprep.subr.bf16.mxu0 %v2881_v0 }
 0x169   :  { %v224_v15 = vpop.permute.xlu0 %223 }
 0x16a   :  { %v230_v16 = vsel %vm228_vm3, %v224_v15, 0  ;;  %2476 = vmatmul.mubr.msk.bf16.vlgmr.msra.gmra.mrb[0].mxu1 %vm107_vm2, %v2983_v6 }
 0x16b   :  { %2486 = vmatpush3.bf16.msra.mxu1 %v230_v16  ;;  %2487 = vmatprep.mubr.msk.bf16.mxu1 %vm2882_vm0, %v2881_v0 }
 0x16c   :  { %2497 = vmatprep.subr.bf16.mxu1 %v2881_v0 }
 0x16d   :  { %v327_v27 = vpop.permute.xlu0 %326 }
 0x16e   :  { %2482 = vmatmul.mubr.msk.bf16.vlgmr.msra.gmra.mrb[4].mxu0 %vm107_vm2, %v2987_v10  ;;  %v332_v41 = vsel %vm107_vm2, %v327_v27, 0 }
 0x16f   :  { %2493 = vmatprep.mubr.msk.bf16.mxu0 %vm2882_vm0, %v2881_v0 }
 0x171   :  { %v377_v32 = vpop.permute.xlu0 %376 }
 0x172   :  { %v382_v44 = vsel %vm107_vm2, %v377_v32, 0 }
 0x175   :  { %v325_v37 = vpop.permute.xlu0 %324 }
 0x179   :  { %v375_v40 = vpop.permute.xlu0 %374 }
 0x17d   :  { %v445_v45 = vpop.permute.xlu0 %444 }
 0x17e   :  { %v450_v46 = vsel %vm228_vm3, %v445_v45, 0 }
 0x23d   :  { %v148_v17 = vpop.f32.mrb[0].mxu1 }
 0x23e   :  { %v2477_v18 = vpop.f32.mrb[1].mxu1  ;;  %v203_v19 = vsel %vm202_vm4, %v148_v17, -inf }
 0x23f   :  { %204 = vmax.xlane.f32.xlu1 %v203_v19  ;;  %v151_v20 = vpop.f32.mrb[2].mxu1 }
 0x240   :  { %v2478_v21 = vpop.f32.mrb[3].mxu1 }
 0x241   :  { %v196_v22 = vpop.f32.mrb[4].mxu0 }
 0x242   :  { %v2483_v23 = vpop.f32.mrb[5].mxu0  ;;  %v206_v24 = vsel %vm202_vm4, %v196_v22, -inf }
 0x243   :  { %207 = vmax.xlane.f32.xlu1 %v206_v24  ;;  %v199_v25 = vpop.f32.mrb[6].mxu0 }
 0x244   :  { %v2484_v26 = vpop.f32.mrb[7].mxu0 }
 0x254   :  { %272 = vrot.lane.b32.xlu1 %v2987_v10, %s2884_s20 }
 0x258   :  { %492 = vrot.lane.b32.xlu1 %v2987_v10, %s2887_s23 }
 0x2cc   :  { %v205_v28 = vpop.xlane.xlu1 %204 }
 0x2cd   :  { %v209_v29 = vsub.f32 %v148_v17, %v205_v28 }
 0x2cf   :  { %v211_v30 = vmul.f32 1.442695, %v209_v29 }
 0x2d0   :  { %v208_v31 = vpop.xlane.xlu1 %207 }
 0x2d1   :  { %2753 = vpow2.f32 %v211_v30  ;;  %v210_v33 = vsub.f32 %v196_v22, %v208_v31 }
 0x2d3   :  { %v213_v34 = vmul.f32 1.442695, %v210_v33 }
 0x2d4   :  { %v273_v35 = vpop.permute.xlu1 %272 }
 0x2d5   :  { %2755 = vpow2.f32 %v213_v34  ;;  %v278_v36 = vsel %vm228_vm3, %v273_v35, 0 }
 0x2d6   :  { %2492 = vmatpush3.bf16.msra.mxu0 %v278_v36 }
 0x2d7   :  { %2503 = vmatprep.subr.bf16.mxu0 %v2881_v0 }
 0x2d8   :  { %v493_v47 = vpop.permute.xlu1 %492 }
 0x2d9   :  { %v498_v48 = vsel %vm228_vm3, %v493_v47, 0 }
 0x2db   :  { %v3025_v38 = vpop.eup %2753 }
 0x2dc   :  { %v221_v39 = vpack.c.bf16 %v3025_v38, %v3025_v38 }
 0x2de   :  { %2488 = vmatmul.mubr.msk.bf16.vlgmr.msra.gmra.mrb[4].mxu1 %vm202_vm4, %v221_v39 }
 0x2df   :  { %v3031_v42 = vpop.eup %2755  ;;  %2498 = vmatpush3.bf16.xpose.msra.mxu1 %v332_v41  ;;  %2499 = vmatprep.mubr.msk.bf16.mxu1 %vm2882_vm0, %v2881_v0 }
 0x2e0   :  { %v222_v43 = vpack.c.bf16 %v3031_v42, %v3031_v42  ;;  %2509 = vmatprep.subr.bf16.mxu1 %v2881_v0 }
 0x2e2   :  { %2494 = vmatmul.mubr.msk.bf16.vlgmr.msra.gmra.mrb[8].mxu0 %vm202_vm4, %v222_v43 }
 0x2e3   :  { %2504 = vmatpush3.bf16.xpose.msra.mxu0 %v382_v44  ;;  %2505 = vmatprep.mubr.msk.bf16.mxu0 %vm2882_vm0, %v2881_v0 }
 0x2e4   :  { %2515 = vmatprep.subr.bf16.mxu0 %v2881_v0 }
 0x2e6   :  { %2500 = vmatmul.mubr.msk.bf16.vlgmr.msra.gmra.mrb[8].mxu1 %vm107_vm2, %v325_v37 }
 0x2e7   :  { %2510 = vmatpush3.bf16.msra.mxu1 %v450_v46  ;;  %2511 = vmatprep.mubr.msk.bf16.mxu1 %vm2882_vm0, %v2881_v0 }
 0x2e8   :  { %2521 = vmatprep.subr.bf16.mxu1 %v2881_v0 }
 0x2ea   :  { %2506 = vmatmul.mubr.msk.bf16.vlgmr.msra.gmra.mrb[12].mxu0 %vm107_vm2, %v375_v40 }
 0x2eb   :  { %2516 = vmatpush3.bf16.msra.mxu0 %v498_v48  ;;  %2517 = vmatprep.mubr.msk.bf16.mxu0 %vm2882_vm0, %v2881_v0 }
 0x2ec   :  { %2527 = vmatprep.subr.bf16.mxu0 %v2881_v0 }
 0x3b1   :  { %v3053_v49 = vpop.f32.mrb[4].mxu1 }
 0x3b2   :  { %v2489_v50 = vpop.f32.mrb[5].mxu1 }
 0x3b3   :  { %v269_v51 = vpop.f32.mrb[6].mxu1 }
 0x3b4   :  { %v2490_v52 = vpop.f32.mrb[7].mxu1 }
 0x3b5   :  { %v3055_v53 = vpop.f32.mrb[8].mxu0 }
 0x3b6   :  { %v2495_v54 = vpop.f32.mrb[9].mxu0 }
 0x3b7   :  { %v317_v55 = vpop.f32.mrb[10].mxu0 }
 0x3b8   :  { %v2496_v56 = vpop.f32.mrb[11].mxu0 }
 0x3b9   :  { %v368_v57 = vpop.f32.mrb[8].mxu1 }
 0x3ba   :  { %v2501_v58 = vpop.f32.mrb[9].mxu1  ;;  %v424_v59 = vsel %vm202_vm4, %v368_v57, -inf }
 0x3bb   :  { %v371_v60 = vpop.f32.mrb[10].mxu1  ;;  %425 = vmax.xlane.f32.xlu1 %v424_v59 }
 0x3bc   :  { %v2502_v61 = vpop.f32.mrb[11].mxu1 }
 0x3bd   :  { %v418_v62 = vpop.f32.mrb[12].mxu0 }
 0x3be   :  { %v2507_v63 = vpop.f32.mrb[13].mxu0  ;;  %v427_v4 = vsel %vm202_vm4, %v418_v62, -inf }
 0x3bf   :  { %428 = vmax.xlane.f32.xlu0 %v427_v4  ;;  %v421_v5 = vpop.f32.mrb[14].mxu0 }
 0x3c0   :  { %v2508_v7 = vpop.f32.mrb[15].mxu0 }
 0x3cc   :  { %546 = vrot.lane.b32.xlu1 %v2983_v6, %s2888_s24 }
 0x3d0   :  { %544 = vrot.lane.b32.xlu1 %v2983_v6, %s2889_s25 }
 0x3d4   :  { %712 = vrot.lane.b32.xlu1 %v2987_v10, %s2890_s26 }
 0x3d5   :  { %596 = vrot.lane.b32.xlu0 %v2987_v10, %s2888_s24 }
 0x3d9   :  { %594 = vrot.lane.b32.xlu0 %v2987_v10, %s2889_s25 }
 0x3dd   :  { %664 = vrot.lane.b32.xlu0 %v2983_v6, %s2890_s26 }
 0x448   :  { %v426_v8 = vpop.xlane.xlu1 %425 }
 0x449   :  { %v430_v9 = vsub.f32 %v368_v57, %v426_v8 }
 0x44b   :  { %v432_v11 = vmul.f32 1.442695, %v430_v9 }
 0x44c   :  { %v429_v12 = vpop.xlane.xlu0 %428  ;;  %v547_v17 = vpop.permute.xlu1 %546 }
 0x44d   :  { %2757 = vpow2.f32 %v432_v11  ;;  %v431_v13 = vsub.f32 %v418_v62, %v429_v12  ;;  %v552_v20 = vsel %vm107_vm2, %v547_v17, 0 }
 0x44f   :  { %v434_v14 = vmul.f32 1.442695, %v431_v13 }
 0x450   :  { %v597_v15 = vpop.permute.xlu0 %596  ;;  %v545_v23 = vpop.permute.xlu1 %544 }
 0x451   :  { %2759 = vpow2.f32 %v434_v14  ;;  %v602_v24 = vsel %vm107_vm2, %v597_v15, 0 }
 0x454   :  { %v595_v19 = vpop.permute.xlu0 %594  ;;  %v713_v27 = vpop.permute.xlu1 %712 }
 0x455   :  { %v718_v28 = vsel %vm228_vm3, %v713_v27, 0 }
 0x457   :  { %v3071_v16 = vpop.eup %2757 }
 0x458   :  { %v442_v18 = vpack.c.bf16 %v3071_v16, %v3071_v16  ;;  %v665_v25 = vpop.permute.xlu0 %664 }
 0x459   :  { %v670_v26 = vsel %vm228_vm3, %v665_v25, 0 }
 0x45a   :  { %2512 = vmatmul.mubr.msk.bf16.vlgmr.msra.gmra.mrb[12].mxu1 %vm202_vm4, %v442_v18 }
 0x45b   :  { %v3077_v21 = vpop.eup %2759  ;;  %2522 = vmatpush3.bf16.xpose.msra.mxu1 %v552_v20  ;;  %2523 = vmatprep.mubr.msk.bf16.mxu1 %vm2882_vm0, %v2881_v0 }
 0x45c   :  { %v443_v22 = vpack.c.bf16 %v3077_v21, %v3077_v21  ;;  %2533 = vmatprep.subr.bf16.mxu1 %v2881_v0 }
 0x45e   :  { %2518 = vmatmul.mubr.msk.bf16.vlgmr.msra.gmra.mrb[16].mxu0 %vm202_vm4, %v443_v22 }
 0x45f   :  { %2528 = vmatpush3.bf16.xpose.msra.mxu0 %v602_v24  ;;  %2529 = vmatprep.mubr.msk.bf16.mxu0 %vm2882_vm0, %v2881_v0 }
 0x460   :  { %2539 = vmatprep.subr.bf16.mxu0 %v2881_v0 }
 0x462   :  { %2524 = vmatmul.mubr.msk.bf16.vlgmr.msra.gmra.mrb[16].mxu1 %vm107_vm2, %v545_v23 }
 0x463   :  { %2534 = vmatpush3.bf16.msra.mxu1 %v670_v26  ;;  %2535 = vmatprep.mubr.msk.bf16.mxu1 %vm2882_vm0, %v2881_v0 }
 0x464   :  { %2545 = vmatprep.subr.bf16.mxu1 %v2881_v0 }
 0x466   :  { %2530 = vmatmul.mubr.msk.bf16.vlgmr.msra.gmra.mrb[20].mxu0 %vm107_vm2, %v595_v19 }
 0x467   :  { %2540 = vmatpush3.bf16.msra.mxu0 %v718_v28  ;;  %2541 = vmatprep.mubr.msk.bf16.mxu0 %vm2882_vm0, %v2881_v0 }
 0x468   :  { %2551 = vmatprep.subr.bf16.mxu0 %v2881_v0 }
 0x52d   :  { %v3099_v29 = vpop.f32.mrb[12].mxu1 }
 0x52e   :  { %v2513_v30 = vpop.f32.mrb[13].mxu1 }
 0x52f   :  { %v489_v31 = vpop.f32.mrb[14].mxu1  ;;  %v436_v30 = vsel %vm202_vm4, %v3071_v16, 0.0 }
 0x530   :  { %v2514_v32 = vpop.f32.mrb[15].mxu1 }
 0x531   :  { %v3101_v33 = vpop.f32.mrb[16].mxu0  ;;  %v439_v32 = vsel %vm202_vm4, %v3077_v21, 0.0 }
 0x532   :  { %v2519_v34 = vpop.f32.mrb[17].mxu0 }
 0x533   :  { %v537_v35 = vpop.f32.mrb[18].mxu0 }
 0x534   :  { %v2520_v36 = vpop.f32.mrb[19].mxu0 }
 0x535   :  { %v588_v37 = vpop.f32.mrb[16].mxu1 }
 0x536   :  { %v2525_v39 = vpop.f32.mrb[17].mxu1  ;;  %v644_v40 = vsel %vm202_vm4, %v588_v37, -inf }
 0x537   :  { %645 = vmax.xlane.f32.xlu1 %v644_v40  ;;  %v591_v41 = vpop.f32.mrb[18].mxu1 }
 0x538   :  { %v2526_v43 = vpop.f32.mrb[19].mxu1 }
 0x539   :  { %v638_v44 = vpop.f32.mrb[20].mxu0 }
 0x53a   :  { %v2531_v45 = vpop.f32.mrb[21].mxu0  ;;  %v647_v46 = vsel %vm202_vm4, %v638_v44, -inf }
 0x53b   :  { %648 = vmax.xlane.f32.xlu0 %v647_v46  ;;  %v641_v47 = vpop.f32.mrb[22].mxu0 }
 0x53c   :  { %v2532_v48 = vpop.f32.mrb[23].mxu0  ;;  %v215_v47 = vsel %vm202_vm4, %v3025_v38, 0.0 }
 0x548   :  { %766 = vrot.lane.b32.xlu1 %v2983_v6, %s2891_s27 }
 0x54c   :  { %764 = vrot.lane.b32.xlu1 %v2983_v6, %s2892_s28 }
 0x551   :  { %816 = vrot.lane.b32.xlu0 %v2987_v10, %s2891_s27 }
 0x555   :  { %814 = vrot.lane.b32.xlu0 %v2987_v10, %s2892_s28 }
 0x5c4   :  { %v646_v50 = vpop.xlane.xlu1 %645 }
 0x5c5   :  { %v650_v51 = vsub.f32 %v588_v37, %v646_v50 }
 0x5c7   :  { %v652_v52 = vmul.f32 1.442695, %v650_v51  ;;  %v218_v51 = vsel %vm202_vm4, %v3031_v42, 0.0 }
 0x5c8   :  { %v649_v54 = vpop.xlane.xlu0 %648  ;;  %v767_v58 = vpop.permute.xlu1 %766 }
 0x5c9   :  { %2761 = vpow2.f32 %v652_v52  ;;  %v651_v55 = vsub.f32 %v638_v44, %v649_v54  ;;  %v772_v60 = vsel %vm107_vm2, %v767_v58, 0 }
 0x5cb   :  { %v654_v56 = vmul.f32 1.442695, %v651_v55 }
 0x5cc   :  { %v817_v62 = vpop.permute.xlu0 %816  ;;  %v765_v5 = vpop.permute.xlu1 %764 }
 0x5cd   :  { %2763 = vpow2.f32 %v654_v56  ;;  %v822_v4 = vsel %vm107_vm2, %v817_v62, 0 }
 0x5d0   :  { %v815_v7 = vpop.permute.xlu0 %814 }
 0x5d3   :  { %v2762_v57 = vpop.eup %2761 }
 0x5d4   :  { %v662_v59 = vpack.c.bf16 %v2762_v57, %v2762_v57  ;;  %v656_v34 = vsel %vm202_vm4, %v2762_v57, 0.0 }
 0x5d6   :  { %2536 = vmatmul.mubr.msk.bf16.vlgmr.msra.gmra.mrb[20].mxu1 %vm202_vm4, %v662_v59 }
 0x5d7   :  { %v2764_v61 = vpop.eup %2763  ;;  %2546 = vmatpush3.bf16.xpose.msra.mxu1 %v772_v60  ;;  %2547 = vmatprep.mubr.msk.bf16.mxu1 %vm2882_vm0, %v2881_v0 }
 0x5d8   :  { %v663_v63 = vpack.c.bf16 %v2764_v61, %v2764_v61  ;;  %2557 = vmatprep.subr.bf16.mxu1 %v2881_v0  ;;  %v659_v31 = vsel %vm202_vm4, %v2764_v61, 0.0 }
 0x5da   :  { %2542 = vmatmul.mubr.msk.bf16.vlgmr.msra.gmra.mrb[24].mxu0 %vm202_vm4, %v663_v63 }
 0x5db   :  { %2552 = vmatpush3.bf16.xpose.msra.mxu0 %v822_v4  ;;  %2553 = vmatprep.mubr.msk.bf16.mxu0 %vm2882_vm0, %v2881_v0 }
 0x5dc   :  { %2563 = vmatprep.subr.bf16.mxu0 %v2881_v0 }
 0x5de   :  { %2548 = vmatmul.mubr.msk.bf16.vlgmr.msra.gmra.mrb[24].mxu1 %vm107_vm2, %v765_v5 }
 0x5df   :  { %2559 = vmatprep.mubr.msk.bf16.mxu1 %vm2882_vm0, %v2881_v0 }
 0x5e2   :  { %2554 = vmatmul.mubr.msk.bf16.vlgmr.msra.gmra.mrb[28].mxu0 %vm107_vm2, %v815_v7 }
 0x5e3   :  { %2565 = vmatprep.mubr.msk.bf16.mxu0 %vm2882_vm0, %v2881_v0 }
 0x6a9   :  { %v3129_v8 = vpop.f32.mrb[20].mxu1 }
 0x6aa   :  { %v2537_v9 = vpop.f32.mrb[21].mxu1 }
 0x6ab   :  { %v709_v11 = vpop.f32.mrb[22].mxu1 }
 0x6ac   :  { %v2538_v12 = vpop.f32.mrb[23].mxu1 }
 0x6ad   :  { %v3131_v13 = vpop.f32.mrb[24].mxu0 }
 0x6ae   :  { %v2543_v14 = vpop.f32.mrb[25].mxu0 }
 0x6af   :  { %v757_v15 = vpop.f32.mrb[26].mxu0 }
 0x6b0   :  { %v2544_v17 = vpop.f32.mrb[27].mxu0 }
 0x6b1   :  { %v808_v18 = vpop.f32.mrb[24].mxu1 }
 0x6b2   :  { %v2549_v19 = vpop.f32.mrb[25].mxu1  ;;  %v864_v20 = vsel %vm202_vm4, %v808_v18, -inf }
 0x6b3   :  { %865 = vmax.xlane.f32.xlu1 %v864_v20  ;;  %v811_v22 = vpop.f32.mrb[26].mxu1 }
 0x6b4   :  { %v2550_v23 = vpop.f32.mrb[27].mxu1 }
 0x6b5   :  { %v858_v24 = vpop.f32.mrb[28].mxu0 }
 0x6b6   :  { %v2555_v25 = vpop.f32.mrb[29].mxu0  ;;  %v867_v26 = vsel %vm202_vm4, %v858_v24, -inf }
 0x6b7   :  { %868 = vmax.xlane.f32.xlu0 %v867_v26  ;;  %v861_v27 = vpop.f32.mrb[30].mxu0 }
 0x6b8   :  { %v2556_v28 = vpop.f32.mrb[31].mxu0 }
 0x6c4   :  { %932 = vrot.lane.b32.xlu1 %v2987_v10, %s2893_s29 }
 0x6cd   :  { %884 = vrot.lane.b32.xlu0 %v2983_v6, %s2893_s29 }
 0x6e8   :  { %437 = vadd.xlane.f32.xlu1 %v436_v30 }
 0x6ec   :  { %660 = vadd.xlane.f32.xlu1 %v659_v31  ;;  %440 = vadd.xlane.f32.xlu0 %v439_v32 }
 0x6f0   :  { %657 = vadd.xlane.f32.xlu0 %v656_v34 }
 0x740   :  { %v866_v35 = vpop.xlane.xlu1 %865 }
 0x741   :  { %v870_v36 = vsub.f32 %v808_v18, %v866_v35 }
 0x743   :  { %v872_v10 = vmul.f32 1.442695, %v870_v36 }
 0x744   :  { %v933_v37 = vpop.permute.xlu1 %932  ;;  %v869_v39 = vpop.xlane.xlu0 %868 }
 0x745   :  { %2765 = vpow2.f32 %v872_v10  ;;  %v938_v6 = vsel %vm228_vm3, %v933_v37, 0  ;;  %v871_v16 = vsub.f32 %v858_v24, %v869_v39 }
 0x746   :  { %2564 = vmatpush3.bf16.msra.mxu0 %v938_v6 }
 0x747   :  { %v874_v40 = vmul.f32 1.442695, %v871_v16  ;;  %2575 = vmatprep.subr.bf16.mxu0 %v2881_v0 }
 0x748   :  { %v885_v41 = vpop.permute.xlu0 %884 }
 0x749   :  { %2767 = vpow2.f32 %v874_v40  ;;  %v890_v21 = vsel %vm228_vm3, %v885_v41, 0 }
 0x74a   :  { %2558 = vmatpush3.bf16.msra.mxu1 %v890_v21 }
 0x74b   :  { %2569 = vmatprep.subr.bf16.mxu1 %v2881_v0 }
 0x74f   :  { %v2766_v43 = vpop.eup %2765 }
 0x750   :  { %v876_v44 = vsel %vm202_vm4, %v2766_v43, 0.0  ;;  %v882_v45 = vpack.c.bf16 %v2766_v43, %v2766_v43 }
 0x751   :  { %877 = vadd.xlane.f32.xlu0 %v876_v44 }
 0x752   :  { %2560 = vmatmul.mubr.msk.bf16.vlgmr.msra.gmra.mrb[28].mxu1 %vm202_vm4, %v882_v45 }
 0x753   :  { %v2768_v46 = vpop.eup %2767  ;;  %2571 = vmatprep.mubr.msk.bf16.mxu1 %vm2882_vm0, %v2881_v0 }
 0x754   :  { %v879_v48 = vsel %vm202_vm4, %v2768_v46, 0.0  ;;  %v883_v50 = vpack.c.bf16 %v2768_v46, %v2768_v46 }
 0x755   :  { %216 = vadd.xlane.f32.xlu0 %v215_v47  ;;  %880 = vadd.xlane.f32.xlu1 %v879_v48 }
 0x756   :  { %2566 = vmatmul.mubr.msk.bf16.vlgmr.msra.gmra.mrb[32].mxu0 %vm202_vm4, %v883_v50 }
 0x757   :  { %2577 = vmatprep.mubr.msk.bf16.mxu0 %vm2882_vm0, %v2881_v0 }
 0x759   :  { %219 = vadd.xlane.f32.xlu1 %v218_v51 }
 0x775   :  { %v438_v52 = vpop.xlane.xlu1 %437 }
 0x776   :  { %2769 = vrcp.f32 %v438_v52 }
 0x779   :  { %v661_v54 = vpop.xlane.xlu1 %660  ;;  %v441_v55 = vpop.xlane.xlu0 %440 }
 0x77a   :  { %2771 = vrcp.f32 %v441_v55 }
 0x77b   :  { %2773 = vrcp.f32 %v661_v54 }
 0x77d   :  { %v658_v38 = vpop.xlane.xlu0 %657 }
 0x77e   :  { %2775 = vrcp.f32 %v658_v38 }
 0x780   :  { %v2770_v56 = vpop.eup %2769 }
 0x781   :  { %v542_v59 = vmul.f32 %v2770_v56, %v3099_v29 }
 0x784   :  { %v2772_v57 = vpop.eup %2771 }
 0x785   :  { %v2774_v58 = vpop.eup %2773  ;;  %v543_v60 = vmul.f32 %v2772_v57, %v3101_v33 }
 0x786   :  { %v763_v63 = vmul.f32 %v2774_v58, %v3131_v13 }
 0x787   :  { %v2719_v62 = vpack.i.bf16 %v543_v60, %v542_v59 }
 0x788   :  { %v2776_v61 = vpop.eup %2775 }
 0x789   :  { %v762_v42 = vmul.f32 %v2776_v61, %v3129_v8  ;;  %2720 = vrot.lane.b32.xlu0 %v2719_v62, %s2880_s12  ;;  %v1090_v62 = vlaneseq }
 0x78b   :  { %v2724_v4 = vpack.i.bf16 %v763_v63, %v762_v42 }
 0x78d   :  { %2725 = vrot.lane.b32.xlu1 %v2724_v4, %s2894_s30  ;;  %1016 = vrot.lane.b32.xlu0 %v2964_v1, %s2895_s8 }
 0x7de   :  { %v878_v5 = vpop.xlane.xlu0 %877 }
 0x7e2   :  { %v217_v7 = vpop.xlane.xlu0 %216  ;;  %v881_v29 = vpop.xlane.xlu1 %880 }
 0x7e3   :  { %2777 = vrcp.f32 %v217_v7 }
 0x7e6   :  { %v220_v33 = vpop.xlane.xlu1 %219 }
 0x7e7   :  { %2779 = vrcp.f32 %v220_v33 }
 0x7e8   :  { %2781 = vrcp.f32 %v878_v5 }
 0x7e9   :  { %2783 = vrcp.f32 %v881_v29  ;;  %v3189_v29 = vshrl.u32 %v1090_v62, 7 }
 0x7eb   :  { %v1092_v33 = vsub.s32 0, %v3189_v29 }
 0x7ed   :  { %v2778_v9 = vpop.eup %2777 }
 0x7ee   :  { %v322_v11 = vmul.f32 %v2778_v9, %v3053_v49 }
 0x7f1   :  { %v2780_v8 = vpop.eup %2779 }
 0x7f2   :  { %v323_v13 = vmul.f32 %v2780_v8, %v3055_v53  ;;  %v2782_v23 = vpop.eup %2781 }
 0x7f3   :  { %v2784_v25 = vpop.eup %2783 }
 0x7fb   :  { %v2721_v12 = vpop.permute.xlu0 %2720 }
 0x7fc   :  { %v2723_v14 = vunpack.i.h.bf16 %v2721_v12  ;;  %v2722_v15 = vunpack.i.l.bf16 %v2721_v12 }
 0x7fe   :  { %v1009_v17 = vsel %vm107_vm2, %v323_v13, %v2723_v14  ;;  %v1008_v18 = vsel %vm107_vm2, %v322_v11, %v2722_v15  ;;  %v1098_v11 = vsub.s32 1, %v3189_v29 }
 0x7ff   :  { %v1017_v19 = vpop.permute.xlu0 %1016  ;;  %v2726_v34 = vpop.permute.xlu1 %2725 }
 0x800   :  { %2570 = vmatpush3.bf16.msra.mxu1 %v1017_v19  ;;  %v2728_v35 = vunpack.i.h.bf16 %v2726_v34  ;;  %v2727_v36 = vunpack.i.l.bf16 %v2726_v34 }
 0x801   :  { %2581 = vmatprep.subr.bf16.mxu1 %v2881_v0 }
 0x802   :  { %v1010_v6 = vsel %vm202_vm4, %v1008_v18, %v2727_v36  ;;  %v1011_v16 = vsel %vm202_vm4, %v1009_v17, %v2728_v35 }
 0x825   :  { %v926_v20 = vpop.f32.mrb[28].mxu1 }
 0x826   :  { %v2561_v22 = vpop.f32.mrb[29].mxu1  ;;  %v982_v53 = vmul.f32 %v2782_v23, %v926_v20 }
 0x827   :  { %v929_v49 = vpop.f32.mrb[30].mxu1 }
 0x828   :  { %v2562_v24 = vpop.f32.mrb[31].mxu1 }
 0x829   :  { %v974_v26 = vpop.f32.mrb[32].mxu0 }
 0x82a   :  { %v983_v27 = vmul.f32 %v2784_v25, %v974_v26  ;;  %v2567_v28 = vpop.f32.mrb[33].mxu0 }
 0x82b   :  { %v977_v30 = vpop.f32.mrb[34].mxu0 }
 0x82c   :  { %v2729_v31 = vpack.i.bf16 %v983_v27, %v982_v53  ;;  %v2568_v32 = vpop.f32.mrb[35].mxu0 }
 0x82e   :  { %2730 = vrot.lane.b32.xlu1 %v2729_v31, %s2896_s9 }
 0x8a0   :  { %v2731_v10 = vpop.permute.xlu1 %2730 }
 0x8a1   :  { %v2733_v37 = vunpack.i.h.bf16 %v2731_v10  ;;  %v2732_v39 = vunpack.i.l.bf16 %v2731_v10 }
 0x8a3   :  { %v1014_v40 = vsel %vm1012_vm5, %v1011_v16, %v2733_v37  ;;  %v1013_v41 = vsel %vm1012_vm5, %v1010_v6, %v2732_v39 }
 0x8a4   :  { %v1015_v21 = vpack.c.bf16 %v1014_v40, %v1013_v41 }
 0x8a6   :  { %2572 = vmatmul.mubr.msk.bf16.vlgmr.msra.gmra.mrb[32].mxu1 %vm54_vm1, %v1015_v21 }
 0x8a7   :  { %2583 = vmatprep.mubr.msk.bf16.mxu1 %vm2882_vm0, %v2881_v0 }
 0x979   :  { %v1056_v43 = vpop.f32.mrb[32].mxu1 }
 0x97a   :  { %v1057_v44 = vadd.f32 %v1056_v43, %v2969_v2  ;;  %v2573_v45 = vpop.f32.mrb[33].mxu1 }
 0x97b   :  { %v1059_v46 = vpop.f32.mrb[34].mxu1 }
 0x97c   :  { %v1060_v47 = vadd.f32 %v1059_v46, %v2974_v3  ;;  %v2574_v48 = vpop.f32.mrb[35].mxu1  ;;  %v1063_v50 = vsel %vm54_vm1, %v1057_v44, 0.0 }
 0x97d   :  { %1064 = vadd.xlane.f32.xlu1 %v1063_v50 }
 0x97e   :  { %v1066_v51 = vsel %vm54_vm1, %v1060_v47, 0.0 }
 0x97f   :  { %1067 = vadd.xlane.f32.xlu0 %v1066_v51 }
 0xa0a   :  { %v1065_v52 = vpop.xlane.xlu1 %1064 }
 0xa0b   :  { %v1070_v54 = vmul.f32 0.0625, %v1065_v52 }
 0xa0c   :  { %v1068_v55 = vpop.xlane.xlu0 %1067 }
 0xa0d   :  { %v1072_v38 = vsub.f32 %v1057_v44, %v1070_v54  ;;  %v1071_v56 = vmul.f32 0.0625, %v1068_v55 }
 0xa0f   :  { %v1073_v57 = vsub.f32 %v1060_v47, %v1071_v56  ;;  %v1074_v58 = vmul.f32 %v1072_v38, %v1072_v38 }
 0xa11   :  { %v1076_v2 = vsel %vm54_vm1, %v1074_v58, 0.0  ;;  %v1075_v59 = vmul.f32 %v1073_v57, %v1073_v57 }
 0xa12   :  { %1077 = vadd.xlane.f32.xlu0 %v1076_v2 }
 0xa13   :  { %v1079_v3 = vsel %vm54_vm1, %v1075_v59, 0.0 }
 0xa14   :  { %1080 = vadd.xlane.f32.xlu1 %v1079_v3 }
 0xa28   :  { %1103 = vrot.lane.b32.xlu0 %v2964_v1, %s2879_s11  ;;  %v3196_v1 = vld [vmem:[%s3463_s6] sm:$0x3f] }
 0xa29   :  { %v1093_v9 = vrot.slane %v3196_v1, %v1092_v33  ;;  %v1099_v17 = vrot.slane %v3196_v1, %v1098_v11 }
 0xa9f   :  { %v1078_v60 = vpop.xlane.xlu0 %1077 }
 0xaa0   :  { %v1082_v61 = vmul.f32 0.0625, %v1078_v60 }
 0xaa1   :  { %v1081_v42 = vpop.xlane.xlu1 %1080 }
 0xaa2   :  { %v1084_v63 = vadd.f32 1e-05, %v1082_v61  ;;  %v1083_v4 = vmul.f32 0.0625, %v1081_v42 }
 0xaa3   :  { %v1104_v5 = vpop.permute.xlu0 %1103 }
 0xaa4   :  { %2785 = vrsqrt.f32 %v1084_v63  ;;  %v1085_v7 = vadd.f32 1e-05, %v1083_v4  ;;  %2576 = vmatpush3.bf16.msra.mxu0 %v1104_v5 }
 0xaa5   :  { %2587 = vmatprep.subr.bf16.mxu0 %v2881_v0 }
 0xaa6   :  { %2787 = vrsqrt.f32 %v1085_v7 }
 0xaae   :  { %v2786_v8 = vpop.eup %2785 }
 0xaaf   :  { %v1088_v12 = vmul.f32 %v2786_v8, %v1072_v38 }
 0xab0   :  { %v2788_v13 = vpop.eup %2787 }
 0xab1   :  { %v1094_v14 = vmul.f32 %v1093_v9, %v1088_v12  ;;  %v1089_v15 = vmul.f32 %v2788_v13, %v1073_v57 }
 0xab3   :  { %v1095_v18 = vmul.f32 %v1093_v9, %v1089_v15  ;;  %v3201_v19 = vadd.f32 %v1099_v17, %v1094_v14 }
 0xab5   :  { %v3203_v20 = vadd.f32 %v1099_v17, %v1095_v18 }
 0xab7   :  { %v1102_v22 = vpack.c.bf16 %v3203_v20, %v3201_v19 }
 0xab9   :  { %2578 = vmatmul.mubr.msk.bf16.vlgmr.msra.gmra.mrb[36].mxu0 %vm54_vm1, %v1102_v22 }
 0xaba   :  { %2589 = vmatprep.mubr.msk.bf16.mxu0 %vm2882_vm0, %v2881_v0 }
 0xb8c   :  { %v1143_v49 = vpop.f32.mrb[36].mxu0 }
 0xb8d   :  { %v3210_v23 = vpack.c.bf16 %v1143_v49, %v1143_v49  ;;  %v2579_v24 = vpop.f32.mrb[37].mxu0 }
 0xb8e   :  { %v1146_v25 = vpop.f32.mrb[38].mxu0 }
 0xb8f   :  { %1272 = vrot.lane.b32.xlu0 %v3210_v23, %s2884_s20  ;;  %1156 = vrot.lane.b32.xlu1 %v3210_v23, %s2883_s0  ;;  %v2580_v26 = vpop.f32.mrb[39].mxu0  ;;  %v3216_v53 = vpack.c.bf16 %v1146_v25, %v1146_v25 }
 0xb93   :  { %1204 = vrot.lane.b32.xlu1 %v3216_v53, %s2883_s0 }
 0xb97   :  { %1320 = vrot.lane.b32.xlu1 %v3216_v53, %s2884_s20 }
 0xc01   :  { %v1157_v27 = vpop.permute.xlu1 %1156  ;;  %v1273_v32 = vpop.permute.xlu0 %1272 }
 0xc02   :  { %v1162_v28 = vsel %vm107_vm2, %v1157_v27, 0  ;;  %v1278_v34 = vsel %vm228_vm3, %v1273_v32, 0 }
 0xc03   :  { %2582 = vmatpush3.bf16.xpose.msra.mxu1 %v1162_v28 }
 0xc04   :  { %2593 = vmatprep.subr.bf16.mxu1 %v2881_v0 }
 0xc05   :  { %v1205_v30 = vpop.permute.xlu1 %1204 }
 0xc06   :  { %v1210_v31 = vsel %vm107_vm2, %v1205_v30, 0 }
 0xc07   :  { %2588 = vmatpush3.bf16.xpose.msra.mxu0 %v1210_v31 }
 0xc08   :  { %2599 = vmatprep.subr.bf16.mxu0 %v2881_v0 }
 0xc09   :  { %v1321_v35 = vpop.permute.xlu1 %1320 }
 0xc0a   :  { %2584 = vmatmul.mubr.msk.bf16.vlgmr.msra.gmra.mrb[36].mxu1 %vm107_vm2, %v3210_v23  ;;  %v1326_v36 = vsel %vm228_vm3, %v1321_v35, 0 }
 0xc0b   :  { %2594 = vmatpush3.bf16.msra.mxu1 %v1278_v34  ;;  %2595 = vmatprep.mubr.msk.bf16.mxu1 %vm2882_vm0, %v2881_v0 }
 0xc0c   :  { %2605 = vmatprep.subr.bf16.mxu1 %v2881_v0 }
 0xc0e   :  { %2590 = vmatmul.mubr.msk.bf16.vlgmr.msra.gmra.mrb[40].mxu0 %vm107_vm2, %v3216_v53 }
 0xc0f   :  { %2600 = vmatpush3.bf16.msra.mxu0 %v1326_v36  ;;  %2601 = vmatprep.mubr.msk.bf16.mxu0 %vm2882_vm0, %v2881_v0 }
 0xc10   :  { %2611 = vmatprep.subr.bf16.mxu0 %v2881_v0 }
 0xcdd   :  { %v1198_v10 = vpop.f32.mrb[36].mxu1 }
 0xcde   :  { %v2585_v37 = vpop.f32.mrb[37].mxu1  ;;  %v1252_v39 = vsel %vm202_vm4, %v1198_v10, -inf }
 0xcdf   :  { %1253 = vmax.xlane.f32.xlu0 %v1252_v39  ;;  %v1201_v6 = vpop.f32.mrb[38].mxu1 }
 0xce0   :  { %v2586_v16 = vpop.f32.mrb[39].mxu1 }
 0xce1   :  { %v1246_v40 = vpop.f32.mrb[40].mxu0 }
 0xce2   :  { %v2591_v41 = vpop.f32.mrb[41].mxu0  ;;  %v1255_v21 = vsel %vm202_vm4, %v1246_v40, -inf }
 0xce3   :  { %1256 = vmax.xlane.f32.xlu1 %v1255_v21  ;;  %v1249_v43 = vpop.f32.mrb[42].mxu0 }
 0xce4   :  { %v2592_v44 = vpop.f32.mrb[43].mxu0 }
 0xcf4   :  { %1424 = vrot.lane.b32.xlu1 %v3216_v53, %s2885_s21 }
 0xcf5   :  { %1374 = vrot.lane.b32.xlu0 %v3210_v23, %s2885_s21 }
 0xcf8   :  { %1422 = vrot.lane.b32.xlu1 %v3216_v53, %s2886_s22 }
 0xcf9   :  { %1372 = vrot.lane.b32.xlu0 %v3210_v23, %s2886_s22 }
 0xcfc   :  { %1540 = vrot.lane.b32.xlu1 %v3216_v53, %s2887_s23 }
 0xcfd   :  { %1492 = vrot.lane.b32.xlu0 %v3210_v23, %s2887_s23 }
 0xd6c   :  { %v1254_v45 = vpop.xlane.xlu0 %1253 }
 0xd6d   :  { %v1258_v46 = vsub.f32 %v1198_v10, %v1254_v45 }
 0xd6f   :  { %v1260_v47 = vmul.f32 1.442695, %v1258_v46 }
 0xd70   :  { %v1257_v48 = vpop.xlane.xlu1 %1256  ;;  %v1375_v52 = vpop.permute.xlu0 %1374 }
 0xd71   :  { %2789 = vpow2.f32 %v1260_v47  ;;  %v1259_v50 = vsub.f32 %v1246_v40, %v1257_v48  ;;  %v1380_v57 = vsel %vm107_vm2, %v1375_v52, 0 }
 0xd73   :  { %v1262_v51 = vmul.f32 1.442695, %v1259_v50 }
 0xd74   :  { %v1425_v55 = vpop.permute.xlu1 %1424  ;;  %v1373_v56 = vpop.permute.xlu0 %1372 }
 0xd75   :  { %2791 = vpow2.f32 %v1262_v51  ;;  %v1430_v3 = vsel %vm107_vm2, %v1425_v55, 0 }
 0xd78   :  { %v1423_v59 = vpop.permute.xlu1 %1422  ;;  %v1493_v60 = vpop.permute.xlu0 %1492 }
 0xd79   :  { %v1498_v61 = vsel %vm228_vm3, %v1493_v60, 0 }
 0xd7b   :  { %v3252_v54 = vpop.eup %2789 }
 0xd7c   :  { %v1270_v38 = vpack.c.bf16 %v3252_v54, %v3252_v54  ;;  %v1541_v62 = vpop.permute.xlu1 %1540 }
 0xd7d   :  { %v1546_v42 = vsel %vm228_vm3, %v1541_v62, 0 }
 0xd7e   :  { %2596 = vmatmul.mubr.msk.bf16.vlgmr.msra.gmra.mrb[40].mxu1 %vm202_vm4, %v1270_v38 }
 0xd7f   :  { %v3258_v58 = vpop.eup %2791  ;;  %2606 = vmatpush3.bf16.xpose.msra.mxu1 %v1380_v57  ;;  %2607 = vmatprep.mubr.msk.bf16.mxu1 %vm2882_vm0, %v2881_v0 }
 0xd80   :  { %v1271_v2 = vpack.c.bf16 %v3258_v58, %v3258_v58  ;;  %2617 = vmatprep.subr.bf16.mxu1 %v2881_v0 }
 0xd82   :  { %2602 = vmatmul.mubr.msk.bf16.vlgmr.msra.gmra.mrb[44].mxu0 %vm202_vm4, %v1271_v2 }
 0xd83   :  { %2612 = vmatpush3.bf16.xpose.msra.mxu0 %v1430_v3  ;;  %2613 = vmatprep.mubr.msk.bf16.mxu0 %vm2882_vm0, %v2881_v0 }
 0xd84   :  { %2623 = vmatprep.subr.bf16.mxu0 %v2881_v0 }
 0xd86   :  { %2608 = vmatmul.mubr.msk.bf16.vlgmr.msra.gmra.mrb[44].mxu1 %vm107_vm2, %v1373_v56 }
 0xd87   :  { %2618 = vmatpush3.bf16.msra.mxu1 %v1498_v61  ;;  %2619 = vmatprep.mubr.msk.bf16.mxu1 %vm2882_vm0, %v2881_v0 }
 0xd88   :  { %2629 = vmatprep.subr.bf16.mxu1 %v2881_v0 }
 0xd8a   :  { %2614 = vmatmul.mubr.msk.bf16.vlgmr.msra.gmra.mrb[48].mxu0 %vm107_vm2, %v1423_v59 }
 0xd8b   :  { %2624 = vmatpush3.bf16.msra.mxu0 %v1546_v42  ;;  %2625 = vmatprep.mubr.msk.bf16.mxu0 %vm2882_vm0, %v2881_v0 }
 0xd8c   :  { %2635 = vmatprep.subr.bf16.mxu0 %v2881_v0 }
 0xe51   :  { %v3280_v63 = vpop.f32.mrb[40].mxu1 }
 0xe52   :  { %v2597_v4 = vpop.f32.mrb[41].mxu1 }
 0xe53   :  { %v1317_v5 = vpop.f32.mrb[42].mxu1 }
 0xe54   :  { %v2598_v7 = vpop.f32.mrb[43].mxu1 }
 0xe55   :  { %v3282_v33 = vpop.f32.mrb[44].mxu0 }
 0xe56   :  { %v2603_v9 = vpop.f32.mrb[45].mxu0 }
 0xe57   :  { %v1365_v11 = vpop.f32.mrb[46].mxu0 }
 0xe58   :  { %v2604_v8 = vpop.f32.mrb[47].mxu0 }
 0xe59   :  { %v1416_v12 = vpop.f32.mrb[44].mxu1 }
 0xe5a   :  { %v2609_v13 = vpop.f32.mrb[45].mxu1  ;;  %v1472_v14 = vsel %vm202_vm4, %v1416_v12, -inf }
 0xe5b   :  { %1473 = vmax.xlane.f32.xlu0 %v1472_v14  ;;  %v1419_v15 = vpop.f32.mrb[46].mxu1 }
 0xe5c   :  { %v2610_v17 = vpop.f32.mrb[47].mxu1 }
 0xe5d   :  { %v1466_v18 = vpop.f32.mrb[48].mxu0 }
 0xe5e   :  { %v2615_v22 = vpop.f32.mrb[49].mxu0  ;;  %v1475_v49 = vsel %vm202_vm4, %v1466_v18, -inf }
 0xe5f   :  { %1476 = vmax.xlane.f32.xlu1 %v1475_v49  ;;  %v1469_v24 = vpop.f32.mrb[50].mxu0 }
 0xe60   :  { %v2616_v25 = vpop.f32.mrb[51].mxu0 }
 0xe70   :  { %1644 = vrot.lane.b32.xlu1 %v3216_v53, %s2888_s24 }
 0xe71   :  { %1594 = vrot.lane.b32.xlu0 %v3210_v23, %s2888_s24 }
 0xe74   :  { %1642 = vrot.lane.b32.xlu1 %v3216_v53, %s2889_s25 }
 0xe75   :  { %1592 = vrot.lane.b32.xlu0 %v3210_v23, %s2889_s25 }
 0xe78   :  { %1760 = vrot.lane.b32.xlu1 %v3216_v53, %s2890_s26 }
 0xe79   :  { %1712 = vrot.lane.b32.xlu0 %v3210_v23, %s2890_s26 }
 0xee8   :  { %v1474_v26 = vpop.xlane.xlu0 %1473 }
 0xee9   :  { %v1478_v27 = vsub.f32 %v1416_v12, %v1474_v26 }
 0xeeb   :  { %v1480_v28 = vmul.f32 1.442695, %v1478_v27 }
 0xeec   :  { %v1477_v30 = vpop.xlane.xlu1 %1476  ;;  %v1595_v34 = vpop.permute.xlu0 %1594 }
 0xeed   :  { %2793 = vpow2.f32 %v1480_v28  ;;  %v1479_v31 = vsub.f32 %v1466_v18, %v1477_v30  ;;  %v1600_v39 = vsel %vm107_vm2, %v1595_v34, 0 }
 0xeef   :  { %v1482_v32 = vmul.f32 1.442695, %v1479_v31 }
 0xef0   :  { %v1645_v36 = vpop.permute.xlu1 %1644  ;;  %v1593_v37 = vpop.permute.xlu0 %1592 }
 0xef1   :  { %2795 = vpow2.f32 %v1482_v32  ;;  %v1650_v41 = vsel %vm107_vm2, %v1645_v36, 0 }
 0xef4   :  { %v1643_v40 = vpop.permute.xlu1 %1642  ;;  %v1713_v21 = vpop.permute.xlu0 %1712 }
 0xef5   :  { %v1718_v43 = vsel %vm228_vm3, %v1713_v21, 0 }
 0xef7   :  { %v3298_v35 = vpop.eup %2793 }
 0xef8   :  { %v1490_v10 = vpack.c.bf16 %v3298_v35, %v3298_v35  ;;  %v1761_v44 = vpop.permute.xlu1 %1760 }
 0xef9   :  { %v1766_v45 = vsel %vm228_vm3, %v1761_v44, 0 }
 0xefa   :  { %2620 = vmatmul.mubr.msk.bf16.vlgmr.msra.gmra.mrb[48].mxu1 %vm202_vm4, %v1490_v10 }
 0xefb   :  { %v3304_v6 = vpop.eup %2795  ;;  %2630 = vmatpush3.bf16.xpose.msra.mxu1 %v1600_v39  ;;  %2631 = vmatprep.mubr.msk.bf16.mxu1 %vm2882_vm0, %v2881_v0 }
 0xefc   :  { %v1491_v16 = vpack.c.bf16 %v3304_v6, %v3304_v6  ;;  %2641 = vmatprep.subr.bf16.mxu1 %v2881_v0 }
 0xefe   :  { %2626 = vmatmul.mubr.msk.bf16.vlgmr.msra.gmra.mrb[52].mxu0 %vm202_vm4, %v1491_v16 }
 0xeff   :  { %2636 = vmatpush3.bf16.xpose.msra.mxu0 %v1650_v41  ;;  %2637 = vmatprep.mubr.msk.bf16.mxu0 %vm2882_vm0, %v2881_v0 }
 0xf00   :  { %2647 = vmatprep.subr.bf16.mxu0 %v2881_v0 }
 0xf02   :  { %2632 = vmatmul.mubr.msk.bf16.vlgmr.msra.gmra.mrb[52].mxu1 %vm107_vm2, %v1593_v37 }
 0xf03   :  { %2642 = vmatpush3.bf16.msra.mxu1 %v1718_v43  ;;  %2643 = vmatprep.mubr.msk.bf16.mxu1 %vm2882_vm0, %v2881_v0 }
 0xf04   :  { %2653 = vmatprep.subr.bf16.mxu1 %v2881_v0 }
 0xf06   :  { %2638 = vmatmul.mubr.msk.bf16.vlgmr.msra.gmra.mrb[56].mxu0 %vm107_vm2, %v1643_v40 }
 0xf07   :  { %2648 = vmatpush3.bf16.msra.mxu0 %v1766_v45  ;;  %2649 = vmatprep.mubr.msk.bf16.mxu0 %vm2882_vm0, %v2881_v0 }
 0xf08   :  { %2659 = vmatprep.subr.bf16.mxu0 %v2881_v0 }
 0xfcd   :  { %v3326_v46 = vpop.f32.mrb[48].mxu1 }
 0xfce   :  { %v2621_v47 = vpop.f32.mrb[49].mxu1 }
 0xfcf   :  { %v1537_v48 = vpop.f32.mrb[50].mxu1 }
 0xfd0   :  { %v2622_v50 = vpop.f32.mrb[51].mxu1  ;;  %v1484_v48 = vsel %vm202_vm4, %v3298_v35, 0.0 }
 0xfd1   :  { %v3328_v51 = vpop.f32.mrb[52].mxu0 }
 0xfd2   :  { %v2627_v52 = vpop.f32.mrb[53].mxu0 }
 0xfd3   :  { %v1585_v55 = vpop.f32.mrb[54].mxu0  ;;  %v1487_v52 = vsel %vm202_vm4, %v3304_v6, 0.0 }
 0xfd4   :  { %v2628_v38 = vpop.f32.mrb[55].mxu0 }
 0xfd5   :  { %v1636_v56 = vpop.f32.mrb[52].mxu1 }
 0xfd6   :  { %v2633_v57 = vpop.f32.mrb[53].mxu1  ;;  %v1692_v2 = vsel %vm202_vm4, %v1636_v56, -inf }
 0xfd7   :  { %1693 = vmax.xlane.f32.xlu0 %v1692_v2  ;;  %v1639_v59 = vpop.f32.mrb[54].mxu1 }
 0xfd8   :  { %v2634_v3 = vpop.f32.mrb[55].mxu1 }
 0xfd9   :  { %v1686_v60 = vpop.f32.mrb[56].mxu0 }
 0xfda   :  { %v2639_v61 = vpop.f32.mrb[57].mxu0  ;;  %v1695_v62 = vsel %vm202_vm4, %v1686_v60, -inf }
 0xfdb   :  { %1696 = vmax.xlane.f32.xlu1 %v1695_v62  ;;  %v1689_v42 = vpop.f32.mrb[58].mxu0 }
 0xfdc   :  { %v2640_v4 = vpop.f32.mrb[59].mxu0 }
 0xfdd   :  { %v1264_v4 = vsel %vm202_vm4, %v3252_v54, 0.0 }
 0xfec   :  { %1864 = vrot.lane.b32.xlu1 %v3216_v53, %s2891_s27 }
 0xfed   :  { %1814 = vrot.lane.b32.xlu0 %v3210_v23, %s2891_s27 }
 0xff0   :  { %1862 = vrot.lane.b32.xlu1 %v3216_v53, %s2892_s28 }
 0xff1   :  { %1812 = vrot.lane.b32.xlu0 %v3210_v23, %s2892_s28 }
0x1064   :  { %v1694_v5 = vpop.xlane.xlu0 %1693 }
0x1065   :  { %v1698_v7 = vsub.f32 %v1636_v56, %v1694_v5 }
0x1067   :  { %v1700_v9 = vmul.f32 1.442695, %v1698_v7 }
0x1068   :  { %v1697_v11 = vpop.xlane.xlu1 %1696  ;;  %v1815_v14 = vpop.permute.xlu0 %1814 }
0x1069   :  { %2797 = vpow2.f32 %v1700_v9  ;;  %v1699_v8 = vsub.f32 %v1686_v60, %v1697_v11  ;;  %v1820_v17 = vsel %vm107_vm2, %v1815_v14, 0  ;;  %v1267_v9 = vsel %vm202_vm4, %v3258_v58, 0.0 }
0x106b   :  { %v1702_v12 = vmul.f32 1.442695, %v1699_v8 }
0x106c   :  { %v1865_v22 = vpop.permute.xlu1 %1864  ;;  %v1813_v25 = vpop.permute.xlu0 %1812 }
0x106d   :  { %2799 = vpow2.f32 %v1702_v12  ;;  %v1870_v24 = vsel %vm107_vm2, %v1865_v22, 0 }
0x1070   :  { %v1863_v26 = vpop.permute.xlu1 %1862 }
0x1073   :  { %v2798_v13 = vpop.eup %2797 }
0x1074   :  { %v1710_v15 = vpack.c.bf16 %v2798_v13, %v2798_v13  ;;  %v1704_v50 = vsel %vm202_vm4, %v2798_v13, 0.0 }
0x1076   :  { %2644 = vmatmul.mubr.msk.bf16.vlgmr.msra.gmra.mrb[56].mxu1 %vm202_vm4, %v1710_v15 }
0x1077   :  { %v2800_v18 = vpop.eup %2799  ;;  %2654 = vmatpush3.bf16.xpose.msra.mxu1 %v1820_v17  ;;  %2655 = vmatprep.mubr.msk.bf16.mxu1 %vm2882_vm0, %v2881_v0 }
0x1078   :  { %v1711_v49 = vpack.c.bf16 %v2800_v18, %v2800_v18  ;;  %2665 = vmatprep.subr.bf16.mxu1 %v2881_v0  ;;  %v1707_v55 = vsel %vm202_vm4, %v2800_v18, 0.0 }
0x107a   :  { %2650 = vmatmul.mubr.msk.bf16.vlgmr.msra.gmra.mrb[60].mxu0 %vm202_vm4, %v1711_v49 }
0x107b   :  { %2660 = vmatpush3.bf16.xpose.msra.mxu0 %v1870_v24  ;;  %2661 = vmatprep.mubr.msk.bf16.mxu0 %vm2882_vm0, %v2881_v0 }
0x107c   :  { %2671 = vmatprep.subr.bf16.mxu0 %v2881_v0 }
0x107e   :  { %2656 = vmatmul.mubr.msk.bf16.vlgmr.msra.gmra.mrb[60].mxu1 %vm107_vm2, %v1813_v25 }
0x107f   :  { %2667 = vmatprep.mubr.msk.bf16.mxu1 %vm2882_vm0, %v2881_v0 }
0x1082   :  { %2662 = vmatmul.mubr.msk.bf16.vlgmr.msra.gmra.mrb[64].mxu0 %vm107_vm2, %v1863_v26 }
0x1083   :  { %2673 = vmatprep.mubr.msk.bf16.mxu0 %vm2882_vm0, %v2881_v0 }
0x1149   :  { %v3356_v27 = vpop.f32.mrb[56].mxu1 }
0x114a   :  { %v2645_v28 = vpop.f32.mrb[57].mxu1 }
0x114b   :  { %v1757_v30 = vpop.f32.mrb[58].mxu1 }
0x114c   :  { %v2646_v31 = vpop.f32.mrb[59].mxu1 }
0x114d   :  { %v3358_v32 = vpop.f32.mrb[60].mxu0 }
0x114e   :  { %v2651_v34 = vpop.f32.mrb[61].mxu0 }
0x114f   :  { %v1805_v36 = vpop.f32.mrb[62].mxu0 }
0x1150   :  { %v2652_v10 = vpop.f32.mrb[63].mxu0 }
0x1151   :  { %v1856_v37 = vpop.f32.mrb[60].mxu1 }
0x1152   :  { %v2657_v39 = vpop.f32.mrb[61].mxu1  ;;  %v1912_v16 = vsel %vm202_vm4, %v1856_v37, -inf }
0x1153   :  { %1913 = vmax.xlane.f32.xlu0 %v1912_v16  ;;  %v1859_v40 = vpop.f32.mrb[62].mxu1 }
0x1154   :  { %v2658_v41 = vpop.f32.mrb[63].mxu1 }
0x1155   :  { %v1906_v21 = vpop.f32.mrb[64].mxu0  ;;  %v2829_v41 = vld [vmem:[%s3458_s1] sm:$0xff]  }
0x1156   :  { %v2663_v43 = vpop.f32.mrb[65].mxu0  ;;  %v1915_v44 = vsel %vm202_vm4, %v1906_v21, -inf }
0x1157   :  { %1916 = vmax.xlane.f32.xlu1 %v1915_v44  ;;  %v1909_v45 = vpop.f32.mrb[66].mxu0 }
0x1158   :  { %v2664_v47 = vpop.f32.mrb[67].mxu0 }
0x1168   :  { %1980 = vrot.lane.b32.xlu1 %v3216_v53, %s2893_s29 }
0x1169   :  { %1932 = vrot.lane.b32.xlu0 %v3210_v23, %s2893_s29 }
0x1188   :  { %1485 = vadd.xlane.f32.xlu0 %v1484_v48 }
0x118c   :  { %1705 = vadd.xlane.f32.xlu0 %v1704_v50  ;;  %1488 = vadd.xlane.f32.xlu1 %v1487_v52 }
0x1190   :  { %1708 = vadd.xlane.f32.xlu0 %v1707_v55 }
0x11e0   :  { %v1914_v38 = vpop.xlane.xlu0 %1913 }
0x11e1   :  { %v1918_v56 = vsub.f32 %v1856_v37, %v1914_v38 }
0x11e3   :  { %v1920_v53 = vmul.f32 1.442695, %v1918_v56 }
0x11e4   :  { %v1933_v57 = vpop.permute.xlu0 %1932  ;;  %v1917_v2 = vpop.xlane.xlu1 %1916 }
0x11e5   :  { %2801 = vpow2.f32 %v1920_v53  ;;  %v1938_v23 = vsel %vm228_vm3, %v1933_v57, 0  ;;  %v1919_v35 = vsub.f32 %v1906_v21, %v1917_v2 }
0x11e6   :  { %2666 = vmatpush3.bf16.msra.mxu1 %v1938_v23 }
0x11e7   :  { %v1922_v59 = vmul.f32 1.442695, %v1919_v35  ;;  %2677 = vmatprep.subr.bf16.mxu1 %v2881_v0 }
0x11e8   :  { %v1981_v3 = vpop.permute.xlu1 %1980 }
0x11e9   :  { %2803 = vpow2.f32 %v1922_v59  ;;  %v1986_v6 = vsel %vm228_vm3, %v1981_v3, 0 }
0x11ea   :  { %2672 = vmatpush3.bf16.msra.mxu0 %v1986_v6 }
0x11eb   :  { %2683 = vmatprep.subr.bf16.mxu0 %v2881_v0 }
0x11ef   :  { %v2802_v60 = vpop.eup %2801 }
0x11f0   :  { %v1924_v61 = vsel %vm202_vm4, %v2802_v60, 0.0  ;;  %v1930_v62 = vpack.c.bf16 %v2802_v60, %v2802_v60 }
0x11f1   :  { %1925 = vadd.xlane.f32.xlu1 %v1924_v61 }
0x11f2   :  { %2668 = vmatmul.mubr.msk.bf16.vlgmr.msra.gmra.mrb[64].mxu1 %vm202_vm4, %v1930_v62 }
0x11f3   :  { %v2804_v42 = vpop.eup %2803  ;;  %2679 = vmatprep.mubr.msk.bf16.mxu1 %vm2882_vm0, %v2881_v0 }
0x11f4   :  { %v1927_v5 = vsel %vm202_vm4, %v2804_v42, 0.0  ;;  %v1931_v7 = vpack.c.bf16 %v2804_v42, %v2804_v42 }
0x11f5   :  { %1265 = vadd.xlane.f32.xlu1 %v1264_v4  ;;  %1928 = vadd.xlane.f32.xlu0 %v1927_v5 }
0x11f6   :  { %2674 = vmatmul.mubr.msk.bf16.vlgmr.msra.gmra.mrb[68].mxu0 %vm202_vm4, %v1931_v7 }
0x11f7   :  { %2685 = vmatprep.mubr.msk.bf16.mxu0 %vm2882_vm0, %v2881_v0 }
0x11f9   :  { %1268 = vadd.xlane.f32.xlu0 %v1267_v9 }
0x1215   :  { %v1486_v11 = vpop.xlane.xlu0 %1485 }
0x1216   :  { %2805 = vrcp.f32 %v1486_v11 }
0x1219   :  { %v1706_v8 = vpop.xlane.xlu0 %1705  ;;  %v1489_v12 = vpop.xlane.xlu1 %1488 }
0x121a   :  { %2807 = vrcp.f32 %v1489_v12 }
0x121b   :  { %2809 = vrcp.f32 %v1706_v8 }
0x121d   :  { %v1709_v54 = vpop.xlane.xlu0 %1708 }
0x121e   :  { %2811 = vrcp.f32 %v1709_v54 }
0x1220   :  { %v2806_v13 = vpop.eup %2805 }
0x1221   :  { %v1590_v17 = vmul.f32 %v2806_v13, %v3326_v46 }
0x1224   :  { %v2808_v14 = vpop.eup %2807 }
0x1225   :  { %v2810_v15 = vpop.eup %2809  ;;  %v1591_v18 = vmul.f32 %v2808_v14, %v3328_v51 }
0x1226   :  { %v1810_v58 = vmul.f32 %v2810_v15, %v3356_v27 }
0x1227   :  { %v2734_v49 = vpack.i.bf16 %v1591_v18, %v1590_v17 }
0x1228   :  { %v2812_v22 = vpop.eup %2811 }
0x1229   :  { %v1811_v24 = vmul.f32 %v2812_v22, %v3358_v32  ;;  %2735 = vrot.lane.b32.xlu1 %v2734_v49, %s2880_s12  ;;  %s2897_s12 = smov 16   ;;  %v2750_v49 = vld [vmem:[#allocation2] sm:$0xff]  }
0x122a   :  { %2684 = vmatpush3.bf16.msra.mxu0 %v2750_v49 }
0x122b   :  { %v2739_v25 = vpack.i.bf16 %v1811_v24, %v1810_v58 }
0x122d   :  { %2740 = vrot.lane.b32.xlu0 %v2739_v25, %s2894_s30 }
0x127e   :  { %v1926_v26 = vpop.xlane.xlu1 %1925 }
0x127f   :  { %2813 = vrcp.f32 %v1926_v26 }
0x1282   :  { %v1929_v28 = vpop.xlane.xlu0 %1928  ;;  %v1266_v21 = vpop.xlane.xlu1 %1265 }
0x1283   :  { %2815 = vrcp.f32 %v1929_v28 }
0x1284   :  { %2817 = vrcp.f32 %v1266_v21  ;;  %v2751_v21 = vld [vmem:[%s3461_s4] sm:$0xff]  }
0x1286   :  { %v1269_v43 = vpop.xlane.xlu0 %1268 }
0x1287   :  { %2819 = vrcp.f32 %v1269_v43  ;;  %v2752_v43 = vld [vmem:[%s3461_s4 + $0x8] sm:$0xff]  }
0x1289   :  { %v2814_v34 = vpop.eup %2813 }
0x128d   :  { %v2816_v36 = vpop.eup %2815 }
0x128e   :  { %v2818_v45 = vpop.eup %2817 }
0x128f   :  { %v1370_v56 = vmul.f32 %v2818_v45, %v3280_v63 }
0x1291   :  { %v2820_v48 = vpop.eup %2819 }
0x1292   :  { %v1371_v53 = vmul.f32 %v2820_v48, %v3282_v33 }
0x129b   :  { %v2736_v44 = vpop.permute.xlu1 %2735 }
0x129c   :  { %v2738_v50 = vunpack.i.h.bf16 %v2736_v44  ;;  %v2737_v52 = vunpack.i.l.bf16 %v2736_v44  ;;  %v2379_v44 = vld [vmem:[%s3460_s3] ss:$0 sm:$0xff]  ;;  %s2898_s3 = smov [#allocation5]  }
0x129d   :  { %s2326_s4 = sshll.u32 %s2898_s3, 4  ;;  %s2327_s4 = int_to_ptr.vmem [resolvable:$true] %s2326_s4 }
0x129e   :  { %v2057_v2 = vsel %vm107_vm2, %v1371_v53, %v2738_v50  ;;  %v2056_v23 = vsel %vm107_vm2, %v1370_v56, %v2737_v52  ;;  %p2857_p9 = scmp.lt.s32.totalorder %s2327_s4, %s2327_s4 }
0x129f   :  { %v2741_v47 = vpop.permute.xlu0 %2740 }
0x12a0   :  { %v2743_v55 = vunpack.i.h.bf16 %v2741_v47  ;;  %v2742_v38 = vunpack.i.l.bf16 %v2741_v47 }
0x12a2   :  { %v2058_v3 = vsel %vm202_vm4, %v2056_v23, %v2742_v38  ;;  %v2059_v6 = vsel %vm202_vm4, %v2057_v2, %v2743_v55 }
0x12c5   :  { %v1974_v30 = vpop.f32.mrb[64].mxu1 }
0x12c6   :  { %v2669_v31 = vpop.f32.mrb[65].mxu1  ;;  %v2030_v37 = vmul.f32 %v2814_v34, %v1974_v30 }
0x12c7   :  { %v1977_v46 = vpop.f32.mrb[66].mxu1  ;;  %v2138_v31 = vsub.s32 2, %v3189_v29 }
0x12c8   :  { %v2670_v51 = vpop.f32.mrb[67].mxu1 }
0x12c9   :  { %v2022_v10 = vpop.f32.mrb[68].mxu0  ;;  %v2139_v34 = vrot.slane %v3196_v1, %v2138_v31 }
0x12ca   :  { %v2031_v27 = vmul.f32 %v2816_v36, %v2022_v10  ;;  %v2675_v39 = vpop.f32.mrb[69].mxu0  ;;  %v2144_v36 = vsub.s32 3, %v3189_v29 }
0x12cb   :  { %v2025_v32 = vpop.f32.mrb[70].mxu0 }
0x12cc   :  { %v2744_v16 = vpack.i.bf16 %v2031_v27, %v2030_v37  ;;  %v2676_v40 = vpop.f32.mrb[71].mxu0  ;;  %v2145_v39 = vrot.slane %v3196_v1, %v2144_v36 }
0x12ce   :  { %2745 = vrot.lane.b32.xlu1 %v2744_v16, %s2896_s9 }
0x12d2   :  { %2063 = vrot.lane.b32.xlu1 %v2829_v41, %s2897_s12 }
0x1340   :  { %v2746_v57 = vpop.permute.xlu1 %2745 }
0x1341   :  { %v2748_v35 = vunpack.i.h.bf16 %v2746_v57  ;;  %v2747_v59 = vunpack.i.l.bf16 %v2746_v57 }
0x1343   :  { %v2061_v60 = vsel %vm1012_vm5, %v2059_v6, %v2748_v35  ;;  %v2060_v61 = vsel %vm1012_vm5, %v2058_v3, %v2747_v59 }
0x1344   :  { %v2062_v62 = vpack.c.bf16 %v2061_v60, %v2060_v61  ;;  %v2064_v42 = vpop.permute.xlu1 %2063 }
0x1345   :  { %2678 = vmatpush3.bf16.msra.mxu1 %v2064_v42 }
0x1346   :  { %2689 = vmatprep.subr.bf16.mxu1 %v2881_v0 }
0x1348   :  { %2680 = vmatmul.mubr.msk.bf16.vlgmr.msra.gmra.mrb[68].mxu1 %vm54_vm1, %v2062_v62 }
0x1349   :  { %2693 = vmatprep.mubr.msk.bf16.mxu1 %vm2882_vm0, %v2881_v0  ;;  %2690 = vmatpush3.bf16.msra.mxu1 %v2751_v21 }
0x134a   :  { %2691 = vmatprep.subr.bf16.mxu1 %v2881_v0  ;;  %v2382_v0 = vld [vmem:[%s3462_s5] ss:$0 sm:$0xff]  ;;  %s2852_s5 = scalar_lea.vmem %s2327_s4, 256 }
0x134b   :  { %p2853_p8 = scmp.ne.s32.totalorder %s2327_s4, %s2852_s5  ;;  %p2858_p10 = scmp.lt.s32.totalorder %s2852_s5, %s2852_s5 }
0x134d   :  { %2692 = vmatpush3.bf16.msra.mxu1 %v2752_v43  ;;  %p2859_p11 = por %p2858_p10, %p2857_p9 }
0x134f   :  { %p2860_p12 = pnand %p2859_p11, %p2853_p8 }
0x141b   :  { %v2103_v63 = vpop.f32.mrb[68].mxu1 }
0x141c   :  { %v2104_v33 = vadd.f32 %v2103_v63, %v3201_v19  ;;  %v2681_v4 = vpop.f32.mrb[69].mxu1 }
0x141d   :  { %v2106_v5 = vpop.f32.mrb[70].mxu1 }
0x141e   :  { %v2107_v7 = vadd.f32 %v2106_v5, %v3203_v20  ;;  %v2682_v9 = vpop.f32.mrb[71].mxu1  ;;  %v2110_v11 = vsel %vm54_vm1, %v2104_v33, 0.0 }
0x141f   :  { %2111 = vadd.xlane.f32.xlu0 %v2110_v11 }
0x1420   :  { %v2113_v8 = vsel %vm54_vm1, %v2107_v7, 0.0 }
0x1421   :  { %2114 = vadd.xlane.f32.xlu1 %v2113_v8 }
0x14ac   :  { %v2112_v12 = vpop.xlane.xlu0 %2111 }
0x14ad   :  { %v2116_v54 = vmul.f32 0.0625, %v2112_v12 }
0x14ae   :  { %v2115_v13 = vpop.xlane.xlu1 %2114 }
0x14af   :  { %v2118_v14 = vsub.f32 %v2104_v33, %v2116_v54  ;;  %v2117_v15 = vmul.f32 0.0625, %v2115_v13 }
0x14b1   :  { %v2119_v17 = vsub.f32 %v2107_v7, %v2117_v15  ;;  %v2120_v18 = vmul.f32 %v2118_v14, %v2118_v14 }
0x14b3   :  { %v2122_v19 = vsel %vm54_vm1, %v2120_v18, 0.0  ;;  %v2121_v22 = vmul.f32 %v2119_v17, %v2119_v17 }
0x14b4   :  { %2123 = vadd.xlane.f32.xlu0 %v2122_v19  ;;  %v2309_v19 = vsub.s32 4, %v3189_v29 }
0x14b5   :  { %v2125_v20 = vsel %vm54_vm1, %v2121_v22, 0.0  ;;  %v2315_v22 = vsub.s32 5, %v3189_v29 }
0x14b8   :  { %2126 = vadd.xlane.f32.xlu0 %v2125_v20  ;;  %v2310_v20 = vrot.slane %v3196_v1, %v2309_v19 }
0x1541   :  { %v2124_v58 = vpop.xlane.xlu0 %2123 }
0x1542   :  { %v2128_v24 = vmul.f32 0.0625, %v2124_v58 }
0x1544   :  { %v2130_v25 = vadd.f32 1e-05, %v2128_v24  ;;  %v2316_v24 = vrot.slane %v3196_v1, %v2315_v22 }
0x1545   :  { %v2127_v26 = vpop.xlane.xlu0 %2126 }
0x1546   :  { %2821 = vrsqrt.f32 %v2130_v25  ;;  %v2129_v28 = vmul.f32 0.0625, %v2127_v26 }
0x1548   :  { %v2131_v30 = vadd.f32 1e-05, %v2129_v28 }
0x154a   :  { %2823 = vrsqrt.f32 %v2131_v30 }
0x1550   :  { %v2822_v46 = vpop.eup %2821 }
0x1551   :  { %v2134_v51 = vmul.f32 %v2822_v46, %v2118_v14 }
0x1553   :  { %v2140_v37 = vmul.f32 %v2139_v34, %v2134_v51 }
0x1554   :  { %v2824_v10 = vpop.eup %2823 }
0x1555   :  { %v2135_v27 = vmul.f32 %v2824_v10, %v2119_v17  ;;  %v2146_v16 = vadd.f32 %v2145_v39, %v2140_v37 }
0x1557   :  { %v2141_v32 = vmul.f32 %v2139_v34, %v2135_v27 }
0x1559   :  { %v2147_v40 = vadd.f32 %v2145_v39, %v2141_v32 }
0x155b   :  { %v2148_v41 = vpack.c.bf16 %v2147_v40, %v2146_v16 }
0x155d   :  { %2686 = vmatmul.mubr.msk.bf16.vlgmr.msra.gmra.mrb[72].mxu0 %vm54_vm1, %v2148_v41 }
0x1630   :  { %v2201_v45 = vpop.f32.mrb[72].mxu0 }
0x1631   :  { %v2202_v47 = vadd.f32 %v2379_v44, %v2201_v45  ;;  %v2687_v48 = vpop.f32.mrb[73].mxu0 }
0x1632   :  { %v2204_v50 = vpop.f32.mrb[74].mxu0 }
0x1633   :  { %v2205_v52 = vadd.f32 %v2379_v44, %v2204_v50  ;;  %v2688_v55 = vpop.f32.mrb[75].mxu0  ;;  %v2208_v38 = vmax.f32 %v2202_v47, 0.0 }
0x1635   :  { %v2209_v56 = vmax.f32 %v2205_v52, 0.0 }
0x1637   :  { %v2210_v53 = vpack.c.bf16 %v2209_v56, %v2208_v38 }
0x1639   :  { %2694 = vmatmul.mubr.msk.bf16.vlgmr.msra.gmra.mrb[72].mxu1 %vm2234_vm6, %v2210_v53 }
0x170c   :  { %v2272_v57 = vpop.f32.mrb[72].mxu1 }
0x170d   :  { %v2273_v2 = vadd.f32 %v2382_v0, %v2272_v57  ;;  %v2695_v23 = vpop.f32.mrb[73].mxu1 }
0x170e   :  { %v2275_v35 = vpop.f32.mrb[74].mxu1 }
0x170f   :  { %v2276_v59 = vadd.f32 %v2382_v0, %v2275_v35  ;;  %v2696_v3 = vpop.f32.mrb[75].mxu1  ;;  %v2279_v6 = vadd.f32 %v2273_v2, %v2146_v16 }
0x1711   :  { %v2280_v60 = vadd.f32 %v2276_v59, %v2147_v40  ;;  %v2281_v61 = vsel %vm54_vm1, %v2279_v6, 0.0 }
0x1712   :  { %2282 = vadd.xlane.f32.xlu1 %v2281_v61 }
0x1713   :  { %v2284_v62 = vsel %vm54_vm1, %v2280_v60, 0.0 }
0x1714   :  { %2285 = vadd.xlane.f32.xlu0 %v2284_v62 }
0x179f   :  { %v2283_v42 = vpop.xlane.xlu1 %2282 }
0x17a0   :  { %v2287_v63 = vmul.f32 0.0625, %v2283_v42 }
0x17a1   :  { %v2286_v33 = vpop.xlane.xlu0 %2285 }
0x17a2   :  { %v2289_v4 = vsub.f32 %v2279_v6, %v2287_v63  ;;  %v2288_v5 = vmul.f32 0.0625, %v2286_v33 }
0x17a4   :  { %v2290_v7 = vsub.f32 %v2280_v60, %v2288_v5  ;;  %v2291_v9 = vmul.f32 %v2289_v4, %v2289_v4 }
0x17a6   :  { %v2293_v11 = vsel %vm54_vm1, %v2291_v9, 0.0  ;;  %v2292_v8 = vmul.f32 %v2290_v7, %v2290_v7 }
0x17a7   :  { %2294 = vadd.xlane.f32.xlu1 %v2293_v11 }
0x17a8   :  { %v2296_v12 = vsel %vm54_vm1, %v2292_v8, 0.0 }
0x17a9   :  { %2297 = vadd.xlane.f32.xlu0 %v2296_v12 }
0x1834   :  { %v2295_v54 = vpop.xlane.xlu1 %2294 }
0x1835   :  { %v2299_v13 = vmul.f32 0.0625, %v2295_v54 }
0x1836   :  { %v2298_v14 = vpop.xlane.xlu0 %2297 }
0x1837   :  { %v2301_v15 = vadd.f32 1e-05, %v2299_v13  ;;  %v2300_v17 = vmul.f32 0.0625, %v2298_v14 }
0x1839   :  { %2825 = vrsqrt.f32 %v2301_v15  ;;  %v2302_v18 = vadd.f32 1e-05, %v2300_v17 }
0x183b   :  { %2827 = vrsqrt.f32 %v2302_v18 }
0x1843   :  { %v2826_v49 = vpop.eup %2825 }
0x1844   :  { %v2305_v58 = vmul.f32 %v2826_v49, %v2289_v4 }
0x1845   :  { %v2828_v25 = vpop.eup %2827 }
0x1846   :  { %v2311_v26 = vmul.f32 %v2310_v20, %v2305_v58  ;;  %v2306_v28 = vmul.f32 %v2828_v25, %v2290_v7 }
0x1848   :  { %v2312_v30 = vmul.f32 %v2310_v20, %v2306_v28  ;;  %v2317_v31 = vadd.f32 %v2316_v24, %v2311_v26 }
0x184a   :  { %v2318_v46 = vadd.f32 %v2316_v24, %v2312_v30  ;;  %2319 = vst.msk [vmem:[#allocation5] sm:$0xff] %vm54_vm1, %v2317_v31 }
0x184c   :  { %2320 = vst.msk [vmem:[#allocation5 + $0x8] sm:$0xff] %vm54_vm1, %v2318_v46 }
0x184d   :  { %2863 = shalt.err (!%p2860_p12)
}
0x184e   :  { %s2864_s21 = scalar_lea.hbm %s3464_s7, 256 }
0x184f   :  { %p2865_p13 = scmp.ne.s32.totalorder %s3464_s7, %s2864_s21  ;;  %p2868_p0 = scmp.lt.u32.totalorder %s2864_s21, %s3464_s7 }
0x1851   :  { %p2870_p1 = pnand %p2868_p0, %p2865_p13 }
0x1853   :  { %2873 = shalt.err (!%p2870_p1)
}
0x1854   :  { %s2899_s26 = smov 128  }
0x1855   :  { %2332 = dma.vmem_to_hbm [thread:$0]  %s2327_s4, 256, %s3464_s7, [#allocation4], %s2899_s26, %s2899_s26, %s2894_s30  }
0x1856   :  { %2876 = dma.done.wait [#allocation4], 256  }
0x1857   :  { %2877 = vsyncadd [#allocation4], 4294967040 }
0x1858   :  { %2336 = vsyncpa [#allocation3], 1 }
0x1859   :  { %2337 = vsyncpa [#allocation4], 1 }

</bundles_post_ra>
